<compile_context>
chip_gen: v5e
topology: v5e:2x2
jax: 0.10.0
libtpu: 0.0.40
codegen_flags: <defaults>
</compile_context>

<pallas_src>
import functools

import jax
import jax.numpy as jnp
from jax import lax
from jax.experimental import pallas as pl
from jax.experimental.pallas import tpu as pltpu

# ----- static model geometry (from the PyTorch module __init__) -----
C_IN = 4
C1, K1, S1 = 64, 30, 10      # conv1
PK1, PS1 = 15, 5             # pool1
C2, K2, S2 = 32, 25, 10      # conv2
PK2, PS2 = 2, 2              # pool2

CHUNK = S1 * C_IN            # 40 input columns per 10-position chunk
NTAP1 = K1 // S1             # 3 shifted-chunk taps for conv1
TAPPACK = 4                  # conv2 taps packed per MXU dot (K = 4*64 = 256)
NG2 = -(-K2 // TAPPACK)      # 7 packed conv2 dots (taps zero-padded 25 -> 28)
MAX_BBLK = 16                # max batch elements per grid step


def _out_len(n, k, s):
    return (n - k) // s + 1


def _round_up(x, m):
    return (x + m - 1) // m * m


def _sliding_max(v, width):
    """out[r] = max(v[r:r+width]) along axis 0, via a log-tree of shifted maxes."""
    cur, cw = v, 1
    while 2 * cw <= width:
        n = cur.shape[0]
        cur = jnp.maximum(cur[0:n - cw, :], cur[cw:n, :])
        cw *= 2
    if cw < width:
        d = width - cw
        n = cur.shape[0]
        cur = jnp.maximum(cur[0:n - d, :], cur[d:n, :])
    return cur


def phage_branch_kernel(x_ref, w1_ref, b1_ref, w2_ref, b2_ref, out_ref,
                        u_ref, h2_ref, *, Bblk, Lcp, L4):
    """One grid step = Bblk batch elements merged along the row (sublane) axis."""
    NH1 = Bblk * Lcp             # merged chunk rows
    Gp = Lcp // PS1              # pool1 slots per batch element (incl. padded tail)
    M2 = Bblk * Gp               # merged pooled / dense-conv2 rows
    Lh = NH1 - (NTAP1 - 1)       # conv1 rows computed (tail rows never consumed)
    Lu = Lh - (PS1 - 1)          # width-5 sliding-max rows
    U_rows = u_ref.shape[0]

    # ---- conv1 (in-kernel im2col): 3 shifted-tap bf16 MXU dots, f32 accumulate ----
    x2 = x_ref[...]                                            # (NH1, 40) bf16
    acc1 = jnp.dot(x2[0:Lh, :], w1_ref[0], preferred_element_type=jnp.float32)
    for m in range(1, NTAP1):
        acc1 = acc1 + jnp.dot(x2[m:m + Lh, :], w1_ref[m],
                              preferred_element_type=jnp.float32)
    h1 = jnp.maximum(acc1 + b1_ref[...], 0.0)                  # (Lh, 64) f32

    # ---- maxpool1 (k=15, s=5), stage 1: width-5 sliding max (log-tree) ----
    u = _sliding_max(h1, PS1)                                  # (Lu, 64) f32
    u_ref[pl.ds(0, Lu), :] = u
    u_ref[pl.ds(Lu, U_rows - Lu), :] = jnp.zeros((U_rows - Lu, C1), jnp.float32)

    # ---- stage 2: decimate (stride 5) first, then max of 3 offsets 0/5/10 ----
    g = u_ref[pl.ds(0, M2, stride=PS1), :]
    for r in range(1, PK1 // PS1):
        g = jnp.maximum(g, u_ref[pl.ds(PS1 * r, M2, stride=PS1), :])  # (M2, 64) f32
    # pad so every packed conv2 tap slice is a full (M2, 64) window; cast to bf16
    gp = jnp.concatenate(
        [g.astype(jnp.bfloat16),
         jnp.zeros((TAPPACK * NG2 + TAPPACK, C1), jnp.bfloat16)], axis=0)

    # ---- conv2 (dense stride-1 over merged rows), taps packed 4-wide along K ----
    acc2 = jnp.zeros((M2, C2), jnp.float32)
    for gi in range(NG2):
        op = jnp.concatenate(
            [gp[TAPPACK * gi + j:TAPPACK * gi + j + M2, :] for j in range(TAPPACK)],
            axis=-1)                                           # (M2, 256) bf16
        acc2 = acc2 + jnp.dot(op, w2_ref[gi], preferred_element_type=jnp.float32)
    h2_ref[...] = jnp.maximum(acc2 + b2_ref[...], 0.0)         # (M2, 32)

    # ---- conv2 stride-10 subsample fused with maxpool2 (k=2, s=2) ----
    # output row b, lanes [j*C2:(j+1)*C2]  ==  permute(0,2,1)+flatten of PyTorch out
    cols = []
    for j in range(L4):
        col = h2_ref[pl.ds(S2 * PS2 * j, Bblk, stride=Gp), :]
        for kk in range(1, PK2):
            col = jnp.maximum(
                col, h2_ref[pl.ds(S2 * (PS2 * j + kk), Bblk, stride=Gp), :])
        cols.append(col)
    out_ref[0, :, :] = jnp.concatenate(cols, axis=-1)          # (Bblk, L4*C2)


def phage_branch_pallas(x_ncl, w1, b1, w2, b2):
    """x_ncl: (B, 4, L) float32 (PyTorch NCL layout).  Returns (B, L4*32) float32."""
    B, cin, L = x_ncl.shape
    assert cin == C_IN
    assert L % S1 == 0 and K1 % S1 == 0 and PK1 % PS1 == 0
    Lc = L // S1
    L1 = _out_len(L, K1, S1)
    L2 = _out_len(L1, PK1, PS1)
    L3 = _out_len(L2, K2, S2)
    L4 = _out_len(L3, PK2, PS2)
    assert L3 >= 1 and L4 >= 1, "sequence too short for this architecture"
    # Static bounds proving that merged-batch / padded garbage rows are never
    # consumed by any later stage (correctness notes from the review):
    assert L1 == Lc - (NTAP1 - 1)
    assert PS1 * (L2 - 1) + PK1 - 1 <= L1 - 1      # pool1 stays in valid conv1 rows
    assert S2 * (L3 - 1) + K2 - 1 <= L2 - 1        # conv2 stays in valid pool1 rows
    assert PS2 * (L4 - 1) + PK2 - 1 <= L3 - 1      # pool2 stays in valid conv2 rows

    # batch blocking: cap at ceil(B/2) so a 2-TensorCore chip always gets >= 2
    # "parallel" grid steps; MAX_BBLK amortizes per-step overhead for large B.
    Bblk = min(MAX_BBLK, max(1, (B + 1) // 2))
    Bp = _round_up(B, Bblk)
    Lcp = _round_up(Lc, 80)          # multiple of 5 (pool decim.) and 16 (bf16 tiles)
    Gp = Lcp // PS1
    assert L2 <= Gp
    OUT = L4 * C2
    NH1 = Bblk * Lcp
    M2 = Bblk * Gp
    U_rows = _round_up((PK1 // PS1 - 1) * PS1 + PS1 * (M2 - 1) + 1, 8)

    # ---- glue (single memory pass; no 3x-duplicated im2col in HBM) ----
    x_chunk = jnp.transpose(x_ncl, (0, 2, 1)).reshape(B, Lc, CHUNK)
    x_chunk = x_chunk.astype(jnp.bfloat16)
    x_chunk = jnp.pad(x_chunk, ((0, Bp - B), (0, Lcp - Lc), (0, 0)))
    x_chunk = x_chunk.reshape(Bp * Lcp, CHUNK)

    # conv1 weight (64,4,30): tap m, row 4*s + c  <-  w1[o, c, 10*m + s]
    w1_parts = jnp.transpose(w1.reshape(C1, C_IN, NTAP1, S1),
                             (2, 3, 1, 0)).reshape(NTAP1, CHUNK, C1)
    w1_parts = w1_parts.astype(jnp.bfloat16)
    b1_row = b1.reshape(1, C1).astype(jnp.float32)

    # conv2 weight (32,64,25): taps packed 4-wide along the contraction dim
    w2_taps = jnp.transpose(w2, (2, 1, 0))                        # (25, 64, 32)
    w2_taps = jnp.pad(w2_taps, ((0, NG2 * TAPPACK - K2), (0, 0), (0, 0)))
    w2_grp = w2_taps.reshape(NG2, TAPPACK * C1, C2).astype(jnp.bfloat16)
    b2_row = b2.reshape(1, C2).astype(jnp.float32)

    kernel = functools.partial(phage_branch_kernel, Bblk=Bblk, Lcp=Lcp, L4=L4)

    out = pl.pallas_call(
        kernel,
        out_shape=jax.ShapeDtypeStruct((Bp // Bblk, Bblk, OUT), jnp.float32),
        grid_spec=pltpu.PrefetchScalarGridSpec(
            num_scalar_prefetch=0,
            grid=(Bp // Bblk,),
            in_specs=[
                pl.BlockSpec((NH1, CHUNK), lambda b: (b, 0)),
                pl.BlockSpec((NTAP1, CHUNK, C1), lambda b: (0, 0, 0)),
                pl.BlockSpec((1, C1), lambda b: (0, 0)),
                pl.BlockSpec((NG2, TAPPACK * C1, C2), lambda b: (0, 0, 0)),
                pl.BlockSpec((1, C2), lambda b: (0, 0)),
            ],
            out_specs=pl.BlockSpec((1, Bblk, OUT), lambda b: (b, 0, 0)),
            scratch_shapes=[
                pltpu.VMEM((U_rows, C1), jnp.float32),   # pool1 sliding-max buffer
                pltpu.VMEM((M2, C2), jnp.float32),       # dense conv2 output
            ],
        ),
        compiler_params=pltpu.CompilerParams(
            dimension_semantics=("parallel",),
            vmem_limit_bytes=32 * 1024 * 1024),
    )(x_chunk, w1_parts, b1_row, w2_grp, b2_row)

    return out.reshape(Bp, OUT)[:B]


def phage_branch_reference(x, w1, b1, w2, b2):
    """Pure-JAX f32 reference matching the PyTorch forward exactly."""
    dn = ('NCH', 'OIH', 'NCH')
    y = lax.conv_general_dilated(x, w1, (S1,), 'VALID', dimension_numbers=dn)
    y = jnp.maximum(y + b1[None, :, None], 0.0)
    y = lax.reduce_window(y, -jnp.inf, lax.max, (1, 1, PK1), (1, 1, PS1), 'VALID')
    y = lax.conv_general_dilated(y, w2, (S2,), 'VALID', dimension_numbers=dn)
    y = jnp.maximum(y + b2[None, :, None], 0.0)
    y = lax.reduce_window(y, -jnp.inf, lax.max, (1, 1, PK2), (1, 1, PS2), 'VALID')
    y = jnp.transpose(y, (0, 2, 1))
    return y.reshape(y.shape[0], -1)


if __name__ == "__main__":
    # smallest convenient shapes consistent with the module's receptive field:
    # L=3000 -> conv1: 298 -> pool1: 57 -> conv2: 4 -> pool2: 2 -> flat: 64
    B, L = 2, 3000
    key = jax.random.PRNGKey(0)
    kx, kw1, kb1, kw2, kb2 = jax.random.split(key, 5)

    x = jax.random.normal(kx, (B, C_IN, L), dtype=jnp.float32)
    w1 = 0.05 * jax.random.normal(kw1, (C1, C_IN, K1), dtype=jnp.float32)
    b1 = 0.05 * jax.random.normal(kb1, (C1,), dtype=jnp.float32)
    w2 = 0.05 * jax.random.normal(kw2, (C2, C1, K2), dtype=jnp.float32)
    b2 = 0.05 * jax.random.normal(kb2, (C2,), dtype=jnp.float32)

    out = phage_branch_pallas(x, w1, b1, w2, b2)
    jax.block_until_ready(out)

    ref = phage_branch_reference(x, w1, b1, w2, b2)
    assert out.shape == ref.shape == (B, 64), (out.shape, ref.shape)
    # bf16 MXU operands (f32 accumulate): expected error ~ sqrt(K_eff ~ 1600)*2^-9
    # of the ~O(5) output magnitude, so use a bf16-appropriate mixed tolerance.
    err = float(jnp.max(jnp.abs(out - ref)))
    scale = float(jnp.max(jnp.abs(ref)))
    assert err <= 1e-2 + 5e-3 * scale, (err, scale)

    print("KERNEL_OK")
</pallas_src>

<mosaic_0001>
module attributes {stable_mosaic.version = 11 : i64} {
  func.func @phage_branch_kernel(%arg0: i32, %arg1: memref<320x40xbf16, #tpu.memory_space<vmem>>, %arg2: memref<3x40x64xbf16, #tpu.memory_space<vmem>>, %arg3: memref<1x64xf32, #tpu.memory_space<vmem>>, %arg4: memref<7x256x32xbf16, #tpu.memory_space<vmem>>, %arg5: memref<1x32xf32, #tpu.memory_space<vmem>>, %arg6: memref<1x1x64xf32, #tpu.memory_space<vmem>>, %arg7: memref<328x64xf32, #tpu.memory_space<vmem>>, %arg8: memref<64x32xf32, #tpu.memory_space<vmem>>) attributes {dimension_semantics = [#tpu.dimension_semantics<parallel>], iteration_bounds = array<i64: 2>, scalar_prefetch = 0 : i64, scratch_operands = 2 : i64, tpu.core_type = #tpu.core_type<tc>, window_params = [{transform_indices = @transform_0, window_bounds = array<i64: 320, 40>}, {pipeline_mode = #tpu.pipeline_mode<synchronous>, transform_indices = @transform_1, window_bounds = array<i64: 3, 40, 64>}, {pipeline_mode = #tpu.pipeline_mode<synchronous>, transform_indices = @transform_2, window_bounds = array<i64: 1, 64>}, {pipeline_mode = #tpu.pipeline_mode<synchronous>, transform_indices = @transform_3, window_bounds = array<i64: 7, 256, 32>}, {pipeline_mode = #tpu.pipeline_mode<synchronous>, transform_indices = @transform_4, window_bounds = array<i64: 1, 32>}, {transform_indices = @transform_5, window_bounds = array<i64: 1, 1, 64>}]} {
    %c0 = arith.constant 0 : index
    %c0_0 = arith.constant 0 : index
    %0 = vector.load %arg1[%c0, %c0_0] : memref<320x40xbf16, #tpu.memory_space<vmem>>, vector<320x40xbf16>
    %1 = vector.extract_strided_slice %0 {offsets = [0, 0], sizes = [318, 40], strides = [1, 1]} : vector<320x40xbf16> to vector<318x40xbf16>
    %c0_1 = arith.constant 0 : index
    %c0_2 = arith.constant 0 : index
    %c0_3 = arith.constant 0 : index
    %2 = vector.load %arg2[%c0_1, %c0_2, %c0_3] : memref<3x40x64xbf16, #tpu.memory_space<vmem>>, vector<1x40x64xbf16>
    %3 = vector.shape_cast %2 : vector<1x40x64xbf16> to vector<40x64xbf16>
    %cst = arith.constant dense<0.000000e+00> : vector<318x64xf32>
    %4 = tpu.matmul %1, %3, %cst {dimension_numbers = #tpu.dot_dimension_numbers<[1], [0], [0], [1], [0, 0, 1, 1], [], []>} : vector<318x40xbf16>, vector<40x64xbf16>, vector<318x64xf32> -> vector<318x64xf32>
    %5 = vector.extract_strided_slice %0 {offsets = [1, 0], sizes = [318, 40], strides = [1, 1]} : vector<320x40xbf16> to vector<318x40xbf16>
    %c1 = arith.constant 1 : index
    %c0_4 = arith.constant 0 : index
    %c0_5 = arith.constant 0 : index
    %6 = vector.load %arg2[%c1, %c0_4, %c0_5] : memref<3x40x64xbf16, #tpu.memory_space<vmem>>, vector<1x40x64xbf16>
    %7 = vector.shape_cast %6 : vector<1x40x64xbf16> to vector<40x64xbf16>
    %cst_6 = arith.constant dense<0.000000e+00> : vector<318x64xf32>
    %8 = tpu.matmul %5, %7, %cst_6 {dimension_numbers = #tpu.dot_dimension_numbers<[1], [0], [0], [1], [0, 0, 1, 1], [], []>} : vector<318x40xbf16>, vector<40x64xbf16>, vector<318x64xf32> -> vector<318x64xf32>
    %9 = arith.addf %4, %8 : vector<318x64xf32>
    %10 = vector.extract_strided_slice %0 {offsets = [2, 0], sizes = [318, 40], strides = [1, 1]} : vector<320x40xbf16> to vector<318x40xbf16>
    %c2 = arith.constant 2 : index
    %c0_7 = arith.constant 0 : index
    %c0_8 = arith.constant 0 : index
    %11 = vector.load %arg2[%c2, %c0_7, %c0_8] : memref<3x40x64xbf16, #tpu.memory_space<vmem>>, vector<1x40x64xbf16>
    %12 = vector.shape_cast %11 : vector<1x40x64xbf16> to vector<40x64xbf16>
    %cst_9 = arith.constant dense<0.000000e+00> : vector<318x64xf32>
    %13 = tpu.matmul %10, %12, %cst_9 {dimension_numbers = #tpu.dot_dimension_numbers<[1], [0], [0], [1], [0, 0, 1, 1], [], []>} : vector<318x40xbf16>, vector<40x64xbf16>, vector<318x64xf32> -> vector<318x64xf32>
    %14 = arith.addf %9, %13 : vector<318x64xf32>
    %c0_10 = arith.constant 0 : index
    %c0_11 = arith.constant 0 : index
    %15 = vector.load %arg3[%c0_10, %c0_11] : memref<1x64xf32, #tpu.memory_space<vmem>>, vector<1x64xf32>
    %16 = vector.broadcast %15 : vector<1x64xf32> to vector<318x64xf32>
    %17 = arith.addf %14, %16 : vector<318x64xf32>
    %cst_12 = arith.constant 0.000000e+00 : f32
    %18 = vector.broadcast %cst_12 : f32 to vector<318x64xf32>
    %19 = arith.maximumf %17, %18 : vector<318x64xf32>
    %20 = vector.extract_strided_slice %19 {offsets = [0, 0], sizes = [317, 64], strides = [1, 1]} : vector<318x64xf32> to vector<317x64xf32>
    %21 = vector.extract_strided_slice %19 {offsets = [1, 0], sizes = [317, 64], strides = [1, 1]} : vector<318x64xf32> to vector<317x64xf32>
    %22 = arith.maximumf %20, %21 : vector<317x64xf32>
    %23 = vector.extract_strided_slice %22 {offsets = [0, 0], sizes = [315, 64], strides = [1, 1]} : vector<317x64xf32> to vector<315x64xf32>
    %24 = vector.extract_strided_slice %22 {offsets = [2, 0], sizes = [315, 64], strides = [1, 1]} : vector<317x64xf32> to vector<315x64xf32>
    %25 = arith.maximumf %23, %24 : vector<315x64xf32>
    %26 = vector.extract_strided_slice %25 {offsets = [0, 0], sizes = [314, 64], strides = [1, 1]} : vector<315x64xf32> to vector<314x64xf32>
    %27 = vector.extract_strided_slice %25 {offsets = [1, 0], sizes = [314, 64], strides = [1, 1]} : vector<315x64xf32> to vector<314x64xf32>
    %28 = arith.maximumf %26, %27 : vector<314x64xf32>
    %c0_13 = arith.constant 0 : index
    %c0_14 = arith.constant 0 : index
    %29 = vector.load %arg7[%c0_13, %c0_14] : memref<328x64xf32, #tpu.memory_space<vmem>>, vector<314x64xf32>
    tpu.vector_store %arg7[%c0_13, %c0_14], %28 {strides = array<i32>} : memref<328x64xf32, #tpu.memory_space<vmem>>, vector<314x64xf32>,
    %cst_15 = arith.constant 0.000000e+00 : f32
    %30 = vector.broadcast %cst_15 : f32 to vector<14x64xf32>
    %c314 = arith.constant 314 : index
    %c0_16 = arith.constant 0 : index
    %31 = vector.load %arg7[%c314, %c0_16] : memref<328x64xf32, #tpu.memory_space<vmem>>, vector<14x64xf32>
    tpu.vector_store %arg7[%c314, %c0_16], %30 {strides = array<i32>} : memref<328x64xf32, #tpu.memory_space<vmem>>, vector<14x64xf32>,
    %c0_17 = arith.constant 0 : index
    %c0_18 = arith.constant 0 : index
    %32 = tpu.strided_load %arg7[%c0_17, %c0_18] {strides = array<i32: 5, 1>} : memref<328x64xf32, #tpu.memory_space<vmem>>, vector<64x64xf32>
    %c5 = arith.constant 5 : index
    %c0_19 = arith.constant 0 : index
    %33 = tpu.strided_load %arg7[%c5, %c0_19] {strides = array<i32: 5, 1>} : memref<328x64xf32, #tpu.memory_space<vmem>>, vector<64x64xf32>
    %34 = arith.maximumf %32, %33 : vector<64x64xf32>
    %c10 = arith.constant 10 : index
    %c0_20 = arith.constant 0 : index
    %35 = tpu.strided_load %arg7[%c10, %c0_20] {strides = array<i32: 5, 1>} : memref<328x64xf32, #tpu.memory_space<vmem>>, vector<64x64xf32>
    %36 = arith.maximumf %34, %35 : vector<64x64xf32>
    %37 = arith.truncf %36 : vector<64x64xf32> to vector<64x64xbf16>
    %cst_21 = arith.constant 0.000000e+00 : bf16
    %38 = vector.broadcast %cst_21 : bf16 to vector<32x64xbf16>
    %39 = tpu.concatenate %37, %38 in 0 : vector<64x64xbf16>, vector<32x64xbf16> -> vector<96x64xbf16>
    %cst_22 = arith.constant 0.000000e+00 : f32
    %40 = vector.broadcast %cst_22 : f32 to vector<64x32xf32>
    %41 = vector.extract_strided_slice %39 {offsets = [0, 0], sizes = [64, 64], strides = [1, 1]} : vector<96x64xbf16> to vector<64x64xbf16>
    %42 = vector.extract_strided_slice %39 {offsets = [1, 0], sizes = [64, 64], strides = [1, 1]} : vector<96x64xbf16> to vector<64x64xbf16>
    %43 = vector.extract_strided_slice %39 {offsets = [2, 0], sizes = [64, 64], strides = [1, 1]} : vector<96x64xbf16> to vector<64x64xbf16>
    %44 = vector.extract_strided_slice %39 {offsets = [3, 0], sizes = [64, 64], strides = [1, 1]} : vector<96x64xbf16> to vector<64x64xbf16>
    %45 = tpu.concatenate %41, %42, %43, %44 in 1 : vector<64x64xbf16>, vector<64x64xbf16>, vector<64x64xbf16>, vector<64x64xbf16> -> vector<64x256xbf16>
    %c0_23 = arith.constant 0 : index
    %c0_24 = arith.constant 0 : index
    %c0_25 = arith.constant 0 : index
    %46 = vector.load %arg4[%c0_23, %c0_24, %c0_25] : memref<7x256x32xbf16, #tpu.memory_space<vmem>>, vector<1x256x32xbf16>
    %47 = vector.shape_cast %46 : vector<1x256x32xbf16> to vector<256x32xbf16>
    %cst_26 = arith.constant dense<0.000000e+00> : vector<64x32xf32>
    %48 = tpu.matmul %45, %47, %cst_26 {dimension_numbers = #tpu.dot_dimension_numbers<[1], [0], [0], [1], [0, 0, 1, 1], [], []>} : vector<64x256xbf16>, vector<256x32xbf16>, vector<64x32xf32> -> vector<64x32xf32>
    %49 = arith.addf %40, %48 : vector<64x32xf32>
    %50 = vector.extract_strided_slice %39 {offsets = [4, 0], sizes = [64, 64], strides = [1, 1]} : vector<96x64xbf16> to vector<64x64xbf16>
    %51 = vector.extract_strided_slice %39 {offsets = [5, 0], sizes = [64, 64], strides = [1, 1]} : vector<96x64xbf16> to vector<64x64xbf16>
    %52 = vector.extract_strided_slice %39 {offsets = [6, 0], sizes = [64, 64], strides = [1, 1]} : vector<96x64xbf16> to vector<64x64xbf16>
    %53 = vector.extract_strided_slice %39 {offsets = [7, 0], sizes = [64, 64], strides = [1, 1]} : vector<96x64xbf16> to vector<64x64xbf16>
    %54 = tpu.concatenate %50, %51, %52, %53 in 1 : vector<64x64xbf16>, vector<64x64xbf16>, vector<64x64xbf16>, vector<64x64xbf16> -> vector<64x256xbf16>
    %c1_27 = arith.constant 1 : index
    %c0_28 = arith.constant 0 : index
    %c0_29 = arith.constant 0 : index
    %55 = vector.load %arg4[%c1_27, %c0_28, %c0_29] : memref<7x256x32xbf16, #tpu.memory_space<vmem>>, vector<1x256x32xbf16>
    %56 = vector.shape_cast %55 : vector<1x256x32xbf16> to vector<256x32xbf16>
    %cst_30 = arith.constant dense<0.000000e+00> : vector<64x32xf32>
    %57 = tpu.matmul %54, %56, %cst_30 {dimension_numbers = #tpu.dot_dimension_numbers<[1], [0], [0], [1], [0, 0, 1, 1], [], []>} : vector<64x256xbf16>, vector<256x32xbf16>, vector<64x32xf32> -> vector<64x32xf32>
    %58 = arith.addf %49, %57 : vector<64x32xf32>
    %59 = vector.extract_strided_slice %39 {offsets = [8, 0], sizes = [64, 64], strides = [1, 1]} : vector<96x64xbf16> to vector<64x64xbf16>
    %60 = vector.extract_strided_slice %39 {offsets = [9, 0], sizes = [64, 64], strides = [1, 1]} : vector<96x64xbf16> to vector<64x64xbf16>
    %61 = vector.extract_strided_slice %39 {offsets = [10, 0], sizes = [64, 64], strides = [1, 1]} : vector<96x64xbf16> to vector<64x64xbf16>
    %62 = vector.extract_strided_slice %39 {offsets = [11, 0], sizes = [64, 64], strides = [1, 1]} : vector<96x64xbf16> to vector<64x64xbf16>
    %63 = tpu.concatenate %59, %60, %61, %62 in 1 : vector<64x64xbf16>, vector<64x64xbf16>, vector<64x64xbf16>, vector<64x64xbf16> -> vector<64x256xbf16>
    %c2_31 = arith.constant 2 : index
    %c0_32 = arith.constant 0 : index
    %c0_33 = arith.constant 0 : index
    %64 = vector.load %arg4[%c2_31, %c0_32, %c0_33] : memref<7x256x32xbf16, #tpu.memory_space<vmem>>, vector<1x256x32xbf16>
    %65 = vector.shape_cast %64 : vector<1x256x32xbf16> to vector<256x32xbf16>
    %cst_34 = arith.constant dense<0.000000e+00> : vector<64x32xf32>
    %66 = tpu.matmul %63, %65, %cst_34 {dimension_numbers = #tpu.dot_dimension_numbers<[1], [0], [0], [1], [0, 0, 1, 1], [], []>} : vector<64x256xbf16>, vector<256x32xbf16>, vector<64x32xf32> -> vector<64x32xf32>
    %67 = arith.addf %58, %66 : vector<64x32xf32>
    %68 = vector.extract_strided_slice %39 {offsets = [12, 0], sizes = [64, 64], strides = [1, 1]} : vector<96x64xbf16> to vector<64x64xbf16>
    %69 = vector.extract_strided_slice %39 {offsets = [13, 0], sizes = [64, 64], strides = [1, 1]} : vector<96x64xbf16> to vector<64x64xbf16>
    %70 = vector.extract_strided_slice %39 {offsets = [14, 0], sizes = [64, 64], strides = [1, 1]} : vector<96x64xbf16> to vector<64x64xbf16>
    %71 = vector.extract_strided_slice %39 {offsets = [15, 0], sizes = [64, 64], strides = [1, 1]} : vector<96x64xbf16> to vector<64x64xbf16>
    %72 = tpu.concatenate %68, %69, %70, %71 in 1 : vector<64x64xbf16>, vector<64x64xbf16>, vector<64x64xbf16>, vector<64x64xbf16> -> vector<64x256xbf16>
    %c3 = arith.constant 3 : index
    %c0_35 = arith.constant 0 : index
    %c0_36 = arith.constant 0 : index
    %73 = vector.load %arg4[%c3, %c0_35, %c0_36] : memref<7x256x32xbf16, #tpu.memory_space<vmem>>, vector<1x256x32xbf16>
    %74 = vector.shape_cast %73 : vector<1x256x32xbf16> to vector<256x32xbf16>
    %cst_37 = arith.constant dense<0.000000e+00> : vector<64x32xf32>
    %75 = tpu.matmul %72, %74, %cst_37 {dimension_numbers = #tpu.dot_dimension_numbers<[1], [0], [0], [1], [0, 0, 1, 1], [], []>} : vector<64x256xbf16>, vector<256x32xbf16>, vector<64x32xf32> -> vector<64x32xf32>
    %76 = arith.addf %67, %75 : vector<64x32xf32>
    %77 = vector.extract_strided_slice %39 {offsets = [16, 0], sizes = [64, 64], strides = [1, 1]} : vector<96x64xbf16> to vector<64x64xbf16>
    %78 = vector.extract_strided_slice %39 {offsets = [17, 0], sizes = [64, 64], strides = [1, 1]} : vector<96x64xbf16> to vector<64x64xbf16>
    %79 = vector.extract_strided_slice %39 {offsets = [18, 0], sizes = [64, 64], strides = [1, 1]} : vector<96x64xbf16> to vector<64x64xbf16>
    %80 = vector.extract_strided_slice %39 {offsets = [19, 0], sizes = [64, 64], strides = [1, 1]} : vector<96x64xbf16> to vector<64x64xbf16>
    %81 = tpu.concatenate %77, %78, %79, %80 in 1 : vector<64x64xbf16>, vector<64x64xbf16>, vector<64x64xbf16>, vector<64x64xbf16> -> vector<64x256xbf16>
    %c4 = arith.constant 4 : index
    %c0_38 = arith.constant 0 : index
    %c0_39 = arith.constant 0 : index
    %82 = vector.load %arg4[%c4, %c0_38, %c0_39] : memref<7x256x32xbf16, #tpu.memory_space<vmem>>, vector<1x256x32xbf16>
    %83 = vector.shape_cast %82 : vector<1x256x32xbf16> to vector<256x32xbf16>
    %cst_40 = arith.constant dense<0.000000e+00> : vector<64x32xf32>
    %84 = tpu.matmul %81, %83, %cst_40 {dimension_numbers = #tpu.dot_dimension_numbers<[1], [0], [0], [1], [0, 0, 1, 1], [], []>} : vector<64x256xbf16>, vector<256x32xbf16>, vector<64x32xf32> -> vector<64x32xf32>
    %85 = arith.addf %76, %84 : vector<64x32xf32>
    %86 = vector.extract_strided_slice %39 {offsets = [20, 0], sizes = [64, 64], strides = [1, 1]} : vector<96x64xbf16> to vector<64x64xbf16>
    %87 = vector.extract_strided_slice %39 {offsets = [21, 0], sizes = [64, 64], strides = [1, 1]} : vector<96x64xbf16> to vector<64x64xbf16>
    %88 = vector.extract_strided_slice %39 {offsets = [22, 0], sizes = [64, 64], strides = [1, 1]} : vector<96x64xbf16> to vector<64x64xbf16>
    %89 = vector.extract_strided_slice %39 {offsets = [23, 0], sizes = [64, 64], strides = [1, 1]} : vector<96x64xbf16> to vector<64x64xbf16>
    %90 = tpu.concatenate %86, %87, %88, %89 in 1 : vector<64x64xbf16>, vector<64x64xbf16>, vector<64x64xbf16>, vector<64x64xbf16> -> vector<64x256xbf16>
    %c5_41 = arith.constant 5 : index
    %c0_42 = arith.constant 0 : index
    %c0_43 = arith.constant 0 : index
    %91 = vector.load %arg4[%c5_41, %c0_42, %c0_43] : memref<7x256x32xbf16, #tpu.memory_space<vmem>>, vector<1x256x32xbf16>
    %92 = vector.shape_cast %91 : vector<1x256x32xbf16> to vector<256x32xbf16>
    %cst_44 = arith.constant dense<0.000000e+00> : vector<64x32xf32>
    %93 = tpu.matmul %90, %92, %cst_44 {dimension_numbers = #tpu.dot_dimension_numbers<[1], [0], [0], [1], [0, 0, 1, 1], [], []>} : vector<64x256xbf16>, vector<256x32xbf16>, vector<64x32xf32> -> vector<64x32xf32>
    %94 = arith.addf %85, %93 : vector<64x32xf32>
    %95 = vector.extract_strided_slice %39 {offsets = [24, 0], sizes = [64, 64], strides = [1, 1]} : vector<96x64xbf16> to vector<64x64xbf16>
    %96 = vector.extract_strided_slice %39 {offsets = [25, 0], sizes = [64, 64], strides = [1, 1]} : vector<96x64xbf16> to vector<64x64xbf16>
    %97 = vector.extract_strided_slice %39 {offsets = [26, 0], sizes = [64, 64], strides = [1, 1]} : vector<96x64xbf16> to vector<64x64xbf16>
    %98 = vector.extract_strided_slice %39 {offsets = [27, 0], sizes = [64, 64], strides = [1, 1]} : vector<96x64xbf16> to vector<64x64xbf16>
    %99 = tpu.concatenate %95, %96, %97, %98 in 1 : vector<64x64xbf16>, vector<64x64xbf16>, vector<64x64xbf16>, vector<64x64xbf16> -> vector<64x256xbf16>
    %c6 = arith.constant 6 : index
    %c0_45 = arith.constant 0 : index
    %c0_46 = arith.constant 0 : index
    %100 = vector.load %arg4[%c6, %c0_45, %c0_46] : memref<7x256x32xbf16, #tpu.memory_space<vmem>>, vector<1x256x32xbf16>
    %101 = vector.shape_cast %100 : vector<1x256x32xbf16> to vector<256x32xbf16>
    %cst_47 = arith.constant dense<0.000000e+00> : vector<64x32xf32>
    %102 = tpu.matmul %99, %101, %cst_47 {dimension_numbers = #tpu.dot_dimension_numbers<[1], [0], [0], [1], [0, 0, 1, 1], [], []>} : vector<64x256xbf16>, vector<256x32xbf16>, vector<64x32xf32> -> vector<64x32xf32>
    %103 = arith.addf %94, %102 : vector<64x32xf32>
    %c0_48 = arith.constant 0 : index
    %c0_49 = arith.constant 0 : index
    %104 = vector.load %arg5[%c0_48, %c0_49] : memref<1x32xf32, #tpu.memory_space<vmem>>, vector<1x32xf32>
    %105 = vector.broadcast %104 : vector<1x32xf32> to vector<64x32xf32>
    %106 = arith.addf %103, %105 : vector<64x32xf32>
    %cst_50 = arith.constant 0.000000e+00 : f32
    %107 = vector.broadcast %cst_50 : f32 to vector<64x32xf32>
    %108 = arith.maximumf %106, %107 : vector<64x32xf32>
    %c0_51 = arith.constant 0 : index
    %c0_52 = arith.constant 0 : index
    %109 = vector.load %arg8[%c0_51, %c0_52] : memref<64x32xf32, #tpu.memory_space<vmem>>, vector<64x32xf32>
    tpu.vector_store %arg8[%c0_51, %c0_52], %108 {strides = array<i32>} : memref<64x32xf32, #tpu.memory_space<vmem>>, vector<64x32xf32>,
    %c0_53 = arith.constant 0 : index
    %c0_54 = arith.constant 0 : index
    %110 = tpu.strided_load %arg8[%c0_53, %c0_54] {strides = array<i32: 64, 1>} : memref<64x32xf32, #tpu.memory_space<vmem>>, vector<1x32xf32>
    %c10_55 = arith.constant 10 : index
    %c0_56 = arith.constant 0 : index
    %111 = tpu.strided_load %arg8[%c10_55, %c0_56] {strides = array<i32: 64, 1>} : memref<64x32xf32, #tpu.memory_space<vmem>>, vector<1x32xf32>
    %112 = arith.maximumf %110, %111 : vector<1x32xf32>
    %c20 = arith.constant 20 : index
    %c0_57 = arith.constant 0 : index
    %113 = tpu.strided_load %arg8[%c20, %c0_57] {strides = array<i32: 64, 1>} : memref<64x32xf32, #tpu.memory_space<vmem>>, vector<1x32xf32>
    %c30 = arith.constant 30 : index
    %c0_58 = arith.constant 0 : index
    %114 = tpu.strided_load %arg8[%c30, %c0_58] {strides = array<i32: 64, 1>} : memref<64x32xf32, #tpu.memory_space<vmem>>, vector<1x32xf32>
    %115 = arith.maximumf %113, %114 : vector<1x32xf32>
    %116 = tpu.concatenate %112, %115 in 1 : vector<1x32xf32>, vector<1x32xf32> -> vector<1x64xf32>
    %c0_59 = arith.constant 0 : index
    %c0_60 = arith.constant 0 : index
    %c0_61 = arith.constant 0 : index
    %117 = vector.load %arg6[%c0_59, %c0_60, %c0_61] : memref<1x1x64xf32, #tpu.memory_space<vmem>>, vector<1x1x64xf32>
    %118 = vector.shape_cast %117 : vector<1x1x64xf32> to vector<1x64xf32>
    %119 = vector.shape_cast %116 : vector<1x64xf32> to vector<1x1x64xf32>
    tpu.vector_store %arg6[%c0_59, %c0_60, %c0_61], %119 {strides = array<i32>} : memref<1x1x64xf32, #tpu.memory_space<vmem>>, vector<1x1x64xf32>,
    return
  }
  func.func @transform_0(%arg0: i32) -> (i32, i32) {
    %c0_i32 = arith.constant 0 : i32
    %c0_i32_0 = arith.constant 0 : i32
    return %arg0, %c0_i32 : i32, i32
  }
  func.func @transform_1(%arg0: i32) -> (i32, i32, i32) {
    %c0_i32 = arith.constant 0 : i32
    %c0_i32_0 = arith.constant 0 : i32
    %c0_i32_1 = arith.constant 0 : i32
    %c0_i32_2 = arith.constant 0 : i32
    return %c0_i32, %c0_i32_0, %c0_i32_1 : i32, i32, i32
  }
  func.func @transform_2(%arg0: i32) -> (i32, i32) {
    %c0_i32 = arith.constant 0 : i32
    %c0_i32_0 = arith.constant 0 : i32
    %c0_i32_1 = arith.constant 0 : i32
    return %c0_i32, %c0_i32_0 : i32, i32
  }
  func.func @transform_3(%arg0: i32) -> (i32, i32, i32) {
    %c0_i32 = arith.constant 0 : i32
    %c0_i32_0 = arith.constant 0 : i32
    %c0_i32_1 = arith.constant 0 : i32
    %c0_i32_2 = arith.constant 0 : i32
    return %c0_i32, %c0_i32_0, %c0_i32_1 : i32, i32, i32
  }
  func.func @transform_4(%arg0: i32) -> (i32, i32) {
    %c0_i32 = arith.constant 0 : i32
    %c0_i32_0 = arith.constant 0 : i32
    %c0_i32_1 = arith.constant 0 : i32
    return %c0_i32, %c0_i32_0 : i32, i32
  }
  func.func @transform_5(%arg0: i32) -> (i32, i32, i32) {
    %c0_i32 = arith.constant 0 : i32
    %c0_i32_0 = arith.constant 0 : i32
    %c0_i32_1 = arith.constant 0 : i32
    return %arg0, %c0_i32, %c0_i32_0 : i32, i32, i32
  }
}

</mosaic_0001>

<bundles_post_ra>
// kernel: tpu_custom_call.1
= control target key start
LH: loop header
LB: loop body
LE: loop exit
PB: predicated region body
PF: predicated region fallthrough
CT: control target
= control target key end

     0   :  { %10 = vsyncpa [#allocation5], 0  ;;  %s6095_s0 = inlined_call_operand.vmem [shape: bf16[640,40], index: 0, kind: input, shape index: {}]   ;;  %s6096_s1 = inlined_call_operand.vmem [shape: bf16[3,40,64], index: 1, kind: input, shape index: {}]   ;;  %s6097_s2 = inlined_call_operand.vmem [shape: f32[1,64], index: 2, kind: input, shape index: {}]   ;;  %s6098_s3 = inlined_call_operand.vmem [shape: bf16[7,256,32], index: 3, kind: input, shape index: {}]   ;;  %s6099_s4 = inlined_call_operand.vmem [shape: f32[1,32], index: 4, kind: input, shape index: {}]   ;;  %s6100_s5 = inlined_call_operand.hbm [shape: f32[2,1,64], index: 5, kind: output, shape index: {}]  }
   0x1   :  { %12 = vsyncpa [#allocation5 + $0x1], 0  ;;  %s4810_s18 = smov 0   ;;  %s4812_s19 = smov 0  }
   0x2   :  { %s4814_s20 = smov 0   ;;  %s4816_s21 = smov 0  }
   0x3 LB: > { %s4831_s22 = sadd.s32 4294967295, %s4774_s21   ;;  %s3700_s23 = sadd.s32 4294967294, %s4774_s21   ;;  %s4774_s21 = sphi %s4816_s21, %s6106_s21   ;;  %s4770_s20 = sphi %s4814_s20, %s6105_s20   ;;  %s4766_s19 = sphi %s4812_s19, %s6104_s19   ;;  %s4762_s18 = sphi %s4810_s18, %s6103_s18  }
   0x4   : > { %s4835_s24 = sadd.s32 1, %s4774_s21   ;;  %s135_s25 = sadd.s32 1, %s4770_s20 }
   0x5   : > { %s132_s26 = ssub.s32 %s4774_s21, %s4835_s24  ;;  %p145_p0 = scmp.ne.s32.totalorder %s4770_s20, %s4766_s19 }
   0x6   : > { %p133_p1 = scmp.eq.s32.totalorder %s132_s26, 0  ;;  %p146_p2 = scmp.eq.s32.totalorder %s4831_s22, 1 }
   0x7   : > { %p151_p3 = scmp.ne.s32.totalorder %s4766_s19, %s4762_s18  ;;  %p152_p4 = scmp.eq.s32.totalorder %s3700_s23, 1 }
   0x8   : > { %s4846_s27 = scalar_select %p133_p1, %s4770_s20, %s135_s25  }
   0x9   : > { %p4848_p5 = por %p146_p2, %p145_p0  ;;  %p4852_p6 = por %p152_p4, %p151_p3 }
   0xa   : > { %p3703_p7 = scmp.ge.s32.totalorder %s4774_s21, 1  ;;  %p191_p8 = scmp.lt.s32.totalorder %s4774_s21, 3 }
   0xc   : > { %p192_p9 = pnand %p3703_p7, %p191_p8 }
   0xd   : > { %s218_s7 = smul.u32 (!%p192_p9), 40, %s4831_s22  ;;  %s4779_s30 = smov (!%p192_p9), 32  }
   0xe   : > { %195 = sbr.rel (%p192_p9) target bundleno = 1335 (0x537), region = 40  ;;  %s216_s6 = sand.u32 (!%p192_p9), 1, %s4766_s19  }
   0xf   : > { %p219_p10 = scmp.lt.s32.totalorder (!%p192_p9), %s218_s7, 79  ;;  %s3641_s9 = scalar_lea.hbm (!%p192_p9), %s6100_s5, %s4831_s22 }
  0x10   : > { %s217_s10 = scalar_lea.vmem (!%p192_p9), [#allocation4], %s216_s6  ;;  %s3645_s12 = sshll.u32 (!%p192_p9), %s3641_s9, 4  ;;  %s3646_s12 = int_to_ptr.hbm [resolvable:$true] %s3645_s12 }
  0x11   : > { %s3643_s11 = sshll.u32 (!%p192_p9), %s217_s10, 4  ;;  %s3633_s13 = scalar_lea.sflag (!%p192_p9), [#allocation5], %s216_s6  ;;  %s3644_s11 = int_to_ptr.vmem [resolvable:$true] %s3643_s11 }
  0x12   : > { %s4726_s15 = sshra.s32 (!%p192_p9), %s3646_s12, 4  ;;  %s4727_s15 = int_to_ptr.hbm [resolvable:$true] %s4726_s15 }
  0x13   : > { %v3709_v0 = vld [vmem:[%s6096_s1 + $0x24] sm:$0xf]  ;;  %v269_v2 = vld [vmem:[%s6096_s1 + $0x10] sm:$0xf]  ;;  %vm612_vm0 = vcmask 1043456   ;;  %s6108_s7 = smov (!%p219_p10, %s218_s7), 79  ;;  %p4733_p0 = scmp.lt.s32.totalorder %s4727_s15, %s6100_s5 }
  0x14   : > { %v545_v1 = vunpack.c.l.b16 %v3709_v0  ;;  %v3850_v3 = vld [vmem:[%s6096_s1 + $0x38] sm:$0xf]  ;;  %v734_v5 = vunpack.c.l.b16 %v269_v2  ;;  %v4546_v9 = vld [vmem:[%s6096_s1 + $0x1c] sm:$0xff]  ;;  %s3704_s14 = sshll.u32 %s6108_s7, 2  ;;  %v4548_v12 = vld [vmem:[%s6096_s1 + $0x30] sm:$0xff]  ;;  %vm898_vm2 = vcmask 1046528  }
  0x15   : > { %v947_v6 = vunpack.c.l.b16 %v3850_v3  ;;  %s4875_s17 = scalar_lea.vmem %s6095_s0, %s3704_s14  ;;  %v4545_v17 = vld [vmem:[%s6096_s1 + $0x14] sm:$0xff]  ;;  %v4547_v27 = vld [vmem:[%s6096_s1 + $0x28] sm:$0xff]  ;;  %vm376_vm1 = vsmask.f32 7424  ;;  %vm551_vm3 = vcmask 326656   ;;  %v4543_v38 = vld [vmem:[%s6096_s1] sm:$0xff] }
  0x16   : > { %v548_v4 = vpack.c.b16 %v545_v1, %v545_v1  ;;  %v737_v10 = vpack.c.b16 %v734_v5, %v734_v5  ;;  %v4882_v13 = vld [vmem:[%s4875_s17 + $0x90] sm:$0xff]  ;;  %v4885_v14 = vld [vmem:[%s4875_s17 + $0x98] sm:$0xff]  ;;  %v4523_v15 = vld [vmem:[%s4875_s17] sm:$0xff]  ;;  %vm1489_vm4 = vcmask 1045504   ;;  %vm1848_vm5 = vcmask 523264   ;;  %s4777_s14 = smov 64  }
  0x17   : > { %v950_v8 = vpack.c.b16 %v947_v6, %v947_v6  ;;  %v4889_v16 = vld [vmem:[%s4875_s17 + $0x8] sm:$0xff]  ;;  %v521_v18 = vshll.u32 %v4882_v13, 16  ;;  %v525_v19 = vshrl.u32 %v4882_v13, 16  ;;  %v529_v20 = vshll.u32 %v4885_v14, 16  ;;  %v4525_v39 = vld [vmem:[%s4875_s17 + $0x10] sm:$0xff]  ;;  %v4526_v49 = vld [vmem:[%s4875_s17 + $0x18] sm:$0xff] }
  0x18   : > { %v614_v7 = vsel %vm612_vm0, %v548_v4, 0  ;;  %v781_v21 = vsel %vm612_vm0, %v737_v10, 0  ;;  %v899_v22 = vrot.slane %v4523_v15, 1  ;;  %v378_v23 = vshrl.u32 %v4523_v15, 16  ;;  %v4544_v33 = vld [vmem:[%s6096_s1 + $0x8] sm:$0xff]  ;;  %v4527_v57 = vld [vmem:[%s4875_s17 + $0x20] sm:$0xff]  ;;  %vm4327_vm9 = vmneg %vm1848_vm5 }
  0x19   : > { %4661 = vmatpush.bf16.msra.mxu1 %v614_v7  ;;  %621 = vmatpush.bf16.msra.mxu0 %v614_v7  ;;  %v1014_v11 = vsel %vm612_vm0, %v950_v8, 0  ;;  %v380_v24 = vshll.u32 %v4523_v15, 16  ;;  %v4898_v25 = vrot.slane %v521_v18, 1  ;;  %v531_v26 = vrot.slane %v529_v20, 1  ;;  %v4528_v1 = vld [vmem:[%s4875_s17 + $0x28] sm:$0xff]  ;;  %s4728_s16 = scalar_lea.hbm %s4727_s15, 1 }
  0x1a   : > { %1021 = vmatpush.bf16.msra.mxu2 %v1014_v11  ;;  %v900_v28 = vrot.slane %v4889_v16, 1  ;;  %v385_v29 = vshll.u32 %v4889_v16, 16  ;;  %v389_v40 = vshrl.u32 %v4889_v16, 16  ;;  %v393_v41 = vshll.u32 %v4525_v39, 16  ;;  %p4729_p11 = scmp.ne.s32.totalorder %s4727_s15, %s4728_s16 }
  0x1b   : > { %v382_v30 = vrot.slane %v380_v24, 1  ;;  %v527_v31 = vor.u32 %v525_v19, %v4898_v25  ;;  %v533_v42 = vshrl.u32 %v4885_v14, 16  ;;  %v902_v45 = vrot.slane %v4525_v39, 1  ;;  %v4530_v19 = vld [vmem:[%s4875_s17 + $0x38] sm:$0xff] }
  0x1c   : > { %v387_v32 = vrot.slane %v385_v29, 1  ;;  %v901_v36 = vsel %vm898_vm2, %v899_v22, %v900_v28  ;;  %v395_v44 = vrot.slane %v393_v41, 1  ;;  %v397_v50 = vshrl.u32 %v4525_v39, 16  ;;  %p4730_p12 = pnand %p4729_p11, %p4848_p5 }
  0x1d   : > { %4662 = vmatpush.bf16.msra.mxu1 %v4546_v9  ;;  %622 = vmatpush.bf16.msra.mxu0 %v4546_v9  ;;  %v383_v34 = vor.u32 %v382_v30, %v378_v23  ;;  %v532_v35 = vsel %vm376_vm1, %v527_v31, %v531_v26  ;;  %v535_v46 = vor.u32 %v533_v42, %v531_v26  ;;  %v401_v51 = vshll.u32 %v4526_v49, 16  ;;  %v4529_v9 = vld [vmem:[%s4875_s17 + $0x30] sm:$0xff] }
  0x1e   : > { %1022 = vmatpush.bf16.msra.mxu2 %v4548_v12  ;;  %v391_v43 = vor.u32 %v389_v40, %v387_v32  ;;  %v903_v48 = vsel %vm898_vm2, %v900_v28, %v902_v45  ;;  %v399_v52 = vor.u32 %v397_v50, %v395_v44  ;;  %v904_v54 = vrot.slane %v4526_v49, 1  ;;  %v4531_v28 = vld [vmem:[%s4875_s17 + $0x40] sm:$0xff]  ;;  %p4731_p13 = pneg %p4730_p12 }
  0x1f   : > { %v388_v37 = vsel %vm376_vm1, %v383_v34, %v387_v32  ;;  %v403_v53 = vrot.slane %v401_v51, 1  ;;  %v405_v58 = vshrl.u32 %v4526_v49, 16  ;;  %v409_v59 = vshll.u32 %v4527_v57, 16 }
  0x20   : > { %v396_v47 = vsel %vm376_vm1, %v391_v43, %v395_v44  ;;  %v905_v56 = vsel %vm898_vm2, %v902_v45, %v904_v54  ;;  %v906_v62 = vrot.slane %v4527_v57, 1  ;;  %v413_v2 = vshrl.u32 %v4527_v57, 16 }
  0x21   : > { %4663 = vmatpush.bf16.msra.mxu1 %v4545_v17  ;;  %623 = vmatpush.bf16.msra.mxu0 %v4545_v17  ;;  %v404_v55 = vsel %vm376_vm1, %v399_v52, %v403_v53  ;;  %v407_v60 = vor.u32 %v405_v58, %v403_v53  ;;  %v411_v61 = vrot.slane %v409_v59, 1  ;;  %v417_v3 = vshll.u32 %v4528_v1, 16 }
  0x22   : > { %1023 = vmatpush.bf16.msra.mxu2 %v4547_v27  ;;  %v907_v0 = vsel %vm898_vm2, %v904_v54, %v906_v62  ;;  %v908_v6 = vrot.slane %v4528_v1, 1  ;;  %v421_v10 = vshrl.u32 %v4528_v1, 16  ;;  %v425_v11 = vshll.u32 %v4529_v9, 16 }
  0x23   : > { %v412_v63 = vsel %vm376_vm1, %v407_v60, %v411_v61  ;;  %v415_v4 = vor.u32 %v413_v2, %v411_v61  ;;  %v419_v5 = vrot.slane %v417_v3, 1  ;;  %v912_v20 = vrot.slane %v4530_v19, 1 }
  0x24   : > { %3816 = vmatmul.msk.bf16.vlgmr.msra.gmra.mxu1 %vm551_vm3, %v532_v35  ;;  %3798 = vmatmul.msk.bf16.vlgmr.msra.gmra.mxu0 %vm551_vm3, %v388_v37  ;;  %v909_v8 = vsel %vm898_vm2, %v906_v62, %v908_v6  ;;  %v433_v22 = vshll.u32 %v4530_v19, 16  ;;  %v914_v29 = vrot.slane %v4531_v28, 1  ;;  %v437_v30 = vshrl.u32 %v4530_v19, 16 }
  0x25   : > { %788 = vmatpush.bf16.msrb.mxu1 %v781_v21  ;;  %3859 = vmatmul.msk.bf16.vlgmr.msra.gmra.mxu2 %vm551_vm3, %v901_v36  ;;  %v420_v7 = vsel %vm376_vm1, %v415_v4, %v419_v5  ;;  %v423_v12 = vor.u32 %v421_v10, %v419_v5  ;;  %v429_v21 = vshrl.u32 %v4529_v9, 16  ;;  %v441_v31 = vshll.u32 %v4531_v28, 16  ;;  %v4964_v36 = vld [vmem:[%s4875_s17 + $0x48] sm:$0xff] }
  0x26   : > { %v435_v24 = vrot.slane %v433_v22, 1  ;;  %v915_v34 = vsel %vm898_vm2, %v912_v20, %v914_v29  ;;  %v916_v37 = vrot.slane %v4964_v36, 1  ;;  %v453_v51 = vshrl.u32 %v4964_v36, 16 }
  0x27   : > { %vm2038_vm6 = vsmask.f32 6400  ;;  %vm1891_vm7 = vcmask 521216   ;;  %vm2777_vm8 = vcmask 1041408   ;;  %vm3607_vm10 = vcmask 261120  }
  0x28   : > { %v439_v32 = vor.u32 %v437_v30, %v435_v24  ;;  %v917_v44 = vsel %vm898_vm2, %v914_v29, %v916_v37  ;;  %vm3630_vm11 = vcmask 516096  }
  0x29   : > { %789 = vmatpush.bf16.msrb.mxu1 %v4544_v33  ;;  %v443_v33 = vrot.slane %v441_v31, 1 }
  0x2b   : > { %v444_v35 = vsel %vm376_vm1, %v439_v32, %v443_v33 }
  0x2d   : > { %790 = vmatpush.bf16.msrb.mxu1 %v4543_v38  ;;  %v445_v38 = vshrl.u32 %v4531_v28, 16 }
  0x2f   : > { %v447_v41 = vor.u32 %v445_v38, %v443_v33 }
  0x34   : > { %3817 = vmatmul.msk.bf16.gmra.mxu1 %vm551_vm3, %v535_v46  ;;  %3799 = vmatmul.msk.bf16.gmra.mxu0 %vm551_vm3, %v396_v47 }
  0x35   : > { %3860 = vmatmul.msk.bf16.gmra.mxu2 %vm551_vm3, %v903_v48 }
  0x44   : > { %3826 = vmatmul.msk.bf16.vlgmr.msrb.gmra.mxu1 %vm551_vm3, %v4523_v15  ;;  %3800 = vmatmul.msk.bf16.gmra.mxu0 %vm551_vm3, %v404_v55  ;;  %v427_v15 = vrot.slane %v425_v11, 1 }
  0x45   : > { %3861 = vmatmul.msk.bf16.gmra.mxu2 %vm551_vm3, %v905_v56 }
  0x46   : > { %v428_v17 = vsel %vm376_vm1, %v423_v12, %v427_v15  ;;  %v431_v23 = vor.u32 %v429_v21, %v427_v15 }
  0x48   : > { %v436_v27 = vsel %vm376_vm1, %v431_v23, %v435_v24 }
  0x54   : > { %3827 = vmatmul.msk.bf16.gmra.mxu1 %vm551_vm3, %v4889_v16  ;;  %3801 = vmatmul.msk.bf16.gmra.mxu0 %vm551_vm3, %v412_v63  ;;  %v910_v16 = vrot.slane %v4529_v9, 1  ;;  %v4993_v63 = vld [vmem:[%s4875_s17 + $0x58] sm:$0xff] }
  0x55   : > { %3862 = vmatmul.msk.bf16.gmra.mxu2 %vm551_vm3, %v907_v0  ;;  %v920_v0 = vrot.slane %v4993_v63, 1  ;;  %v465_v2 = vshll.u32 %v4993_v63, 16  ;;  %v469_v22 = vshrl.u32 %v4993_v63, 16 }
  0x56   : > { %v911_v18 = vsel %vm898_vm2, %v908_v6, %v910_v16  ;;  %v913_v26 = vsel %vm898_vm2, %v910_v16, %v912_v20  ;;  %v5011_v20 = vld [vmem:[%s6097_s2] ss:$0 sm:$0xff] }
  0x57   : > { %v467_v6 = vrot.slane %v465_v2, 1 }
  0x64   : > { %3828 = vmatmul.msk.bf16.gmra.mxu1 %vm551_vm3, %v4525_v39  ;;  %3802 = vmatmul.msk.bf16.gmra.mxu0 %vm551_vm3, %v420_v7  ;;  %v449_v39 = vshll.u32 %v4964_v36, 16 }
  0x65   : > { %3863 = vmatmul.msk.bf16.gmra.mxu2 %vm551_vm3, %v909_v8 }
  0x66   : > { %v451_v42 = vrot.slane %v449_v39, 1 }
  0x68   : > { %v452_v45 = vsel %vm376_vm1, %v447_v41, %v451_v42  ;;  %v455_v55 = vor.u32 %v453_v51, %v451_v42  ;;  %v5034_v51 = vld [vmem:[%s4875_s17 + $0x68] sm:$0xff] }
  0x74   : > { %3829 = vmatmul.msk.bf16.gmra.mxu1 %vm551_vm3, %v4526_v49  ;;  %3803 = vmatmul.msk.bf16.gmra.mxu0 %vm551_vm3, %v428_v17  ;;  %v4978_v49 = vld [vmem:[%s4875_s17 + $0x50] sm:$0xff]  ;;  %v5006_v17 = vld [vmem:[%s4875_s17 + $0x60] sm:$0xff] }
  0x75   : > { %3864 = vmatmul.msk.bf16.gmra.mxu2 %vm551_vm3, %v911_v18  ;;  %v918_v50 = vrot.slane %v4978_v49, 1  ;;  %v457_v52 = vshll.u32 %v4978_v49, 16  ;;  %v922_v21 = vrot.slane %v5006_v17, 1  ;;  %v473_v23 = vshll.u32 %v5006_v17, 16 }
  0x77   : > { %v459_v56 = vrot.slane %v457_v52, 1  ;;  %v919_v58 = vsel %vm898_vm2, %v916_v37, %v918_v50  ;;  %v921_v8 = vsel %vm898_vm2, %v918_v50, %v920_v0  ;;  %v475_v29 = vrot.slane %v473_v23, 1 }
  0x78   : > { %v923_v33 = vsel %vm898_vm2, %v920_v0, %v922_v21 }
  0x79   : > { %v460_v59 = vsel %vm376_vm1, %v455_v55, %v459_v56 }
  0x84   : > { %3830 = vmatmul.msk.bf16.gmra.mxu1 %vm551_vm3, %v4527_v57  ;;  %3804 = vmatmul.msk.bf16.gmra.mxu0 %vm551_vm3, %v436_v27 }
  0x85   : > { %3865 = vmatmul.msk.bf16.gmra.mxu2 %vm551_vm3, %v913_v26 }
  0x94   : > { %3831 = vmatmul.msk.bf16.gmra.mxu1 %vm551_vm3, %v4528_v1  ;;  %3805 = vmatmul.msk.bf16.gmra.mxu0 %vm551_vm3, %v444_v35  ;;  %v461_v1 = vshrl.u32 %v4978_v49, 16 }
  0x95   : > { %3866 = vmatmul.msk.bf16.gmra.mxu2 %vm551_vm3, %v915_v34 }
  0x96   : > { %v463_v5 = vor.u32 %v461_v1, %v459_v56 }
  0xa1   : > { %v4968_v40 = vpop.f32.mrf.mxu1  ;;  %v625_v43 = vpop.f32.mrf.mxu0 }
  0xa4   : > { %3832 = vmatmul.msk.bf16.gmra.mxu1 %vm551_vm3, %v4529_v9  ;;  %3806 = vmatmul.msk.bf16.gmra.mxu0 %vm551_vm3, %v452_v45  ;;  %v468_v9 = vsel %vm376_vm1, %v463_v5, %v467_v6 }
  0xa5   : > { %3867 = vmatmul.msk.bf16.gmra.mxu2 %vm551_vm3, %v917_v44 }
  0xa8   : > { %v1025_v47 = vpop.f32.mrf.mxu2 }
  0xa9   : > { %v4975_v46 = vpop.f32.mrf.mxu1  ;;  %v627_v48 = vpop.f32.mrf.mxu0 }
  0xb0   : > { %v1027_v54 = vpop.f32.mrf.mxu2 }
  0xb1   : > { %v4983_v53 = vpop.f32.mrf.mxu1  ;;  %v630_v57 = vpop.f32.mrf.mxu0 }
  0xb4   : > { %3833 = vmatmul.msk.bf16.gmra.mxu1 %vm551_vm3, %v4530_v19  ;;  %3807 = vmatmul.msk.bf16.gmra.mxu0 %vm551_vm3, %v460_v59  ;;  %v477_v59 = vshrl.u32 %v5006_v17, 16 }
  0xb5   : > { %3868 = vmatmul.msk.bf16.gmra.mxu2 %vm551_vm3, %v919_v58  ;;  %v924_v58 = vrot.slane %v5034_v51, 1 }
  0xb8   : > { %v1030_v61 = vpop.f32.mrf.mxu2 }
  0xb9   : > { %v4990_v60 = vpop.f32.mrf.mxu1  ;;  %v632_v62 = vpop.f32.mrf.mxu0 }
  0xc0   : > { %v1032_v4 = vpop.f32.mrf.mxu2 }
  0xc1   : > { %v792_v3 = vpop.f32.mrf.mxu1  ;;  %v635_v7 = vpop.f32.mrf.mxu0 }
  0xc2   : > { %v793_v12 = vadd.f32 %v792_v3, %v625_v43  ;;  %v479_v3 = vor.u32 %v477_v59, %v475_v29 }
  0xc4   : > { %3834 = vmatmul.msk.bf16.gmra.mxu1 %vm551_vm3, %v4531_v28  ;;  %3808 = vmatmul.msk.bf16.gmra.mxu0 %vm551_vm3, %v468_v9  ;;  %v1125_v19 = vadd.f32 %v1025_v47, %v793_v12  ;;  %v471_v28 = vor.u32 %v469_v22, %v467_v6 }
  0xc5   : > { %3869 = vmatmul.msk.bf16.gmra.mxu2 %vm551_vm3, %v921_v8 }
  0xc6   : > { %v1169_v30 = vadd.f32 %v5011_v20, %v1125_v19  ;;  %v476_v34 = vsel %vm376_vm1, %v471_v28, %v475_v29 }
  0xc8   : > { %v1035_v11 = vpop.f32.mrf.mxu2  ;;  %v1209_v38 = vmax.f32 %v1169_v30, 0.0 }
  0xc9   : > { %v794_v10 = vpop.f32.mrf.mxu1  ;;  %v5003_v16 = vpop.f32.mrf.mxu0 }
  0xca   : > { %v795_v15 = vadd.f32 %v794_v10, %v627_v48  ;;  %v1290_v45 = vrot.slane %v1209_v38, 1  ;;  %v925_v10 = vsel %vm898_vm2, %v922_v21, %v924_v58 }
  0xcc   : > { %v1126_v18 = vadd.f32 %v1027_v54, %v795_v15 }
  0xce   : > { %v1170_v24 = vadd.f32 %v5011_v20, %v1126_v18 }
  0xd0   : > { %v5017_v27 = vpop.f32.mrf.mxu2  ;;  %v1210_v35 = vmax.f32 %v1170_v24, 0.0 }
  0xd1   : > { %v797_v26 = vpop.f32.mrf.mxu1  ;;  %v5020_v32 = vpop.f32.mrf.mxu0 }
  0xd2   : > { %v798_v31 = vadd.f32 %v797_v26, %v630_v57  ;;  %v1291_v41 = vrot.slane %v1210_v35, 1 }
  0xd4   : > { %v1127_v37 = vadd.f32 %v1030_v61, %v798_v31  ;;  %3835 = vmatmul.msk.bf16.gmra.mxu1 %vm551_vm3, %v4964_v36  ;;  %3809 = vmatmul.msk.bf16.gmra.mxu0 %vm551_vm3, %v476_v34  ;;  %v1292_v36 = vsel %vm898_vm2, %v1290_v45, %v1291_v41  ;;  %v481_v61 = vshll.u32 %v5034_v51, 16  ;;  %v5060_v31 = vld [vmem:[%s4875_s17 + $0x70] sm:$0xff] }
  0xd5   : > { %3870 = vmatmul.msk.bf16.gmra.mxu2 %vm551_vm3, %v923_v33  ;;  %v1409_v57 = vmax.f32 %v1209_v38, %v1292_v36 }
  0xd6   : > { %v1171_v39 = vadd.f32 %v5011_v20, %v1127_v37  ;;  %v483_v5 = vrot.slane %v481_v61, 1 }
  0xd7   : > { %v1490_v9 = vrot.slane %v1409_v57, 2 }
  0xd8   : > { %v1211_v42 = vmax.f32 %v1171_v39, 0.0  ;;  %v5029_v44 = vpop.f32.mrf.mxu2  ;;  %v484_v12 = vsel %vm376_vm1, %v479_v3, %v483_v5 }
  0xd9   : > { %v799_v43 = vpop.f32.mrf.mxu1  ;;  %v5031_v50 = vpop.f32.mrf.mxu0 }
  0xda   : > { %v1293_v47 = vrot.slane %v1211_v42, 1  ;;  %v800_v48 = vadd.f32 %v799_v43, %v632_v62  ;;  %v926_v43 = vrot.slane %v5060_v31, 1 }
  0xdc   : > { %v1294_v52 = vsel %vm898_vm2, %v1291_v41, %v1293_v47  ;;  %v1128_v54 = vadd.f32 %v1032_v4, %v800_v48  ;;  %v489_v48 = vshll.u32 %v5060_v31, 16 }
  0xdd   : > { %v1410_v55 = vmax.f32 %v1210_v35, %v1294_v52 }
  0xde   : > { %v1172_v56 = vadd.f32 %v5011_v20, %v1128_v54 }
  0xdf   : > { %v1491_v0 = vrot.slane %v1410_v55, 2 }
  0xe0   : > { %v1212_v62 = vmax.f32 %v1172_v56, 0.0  ;;  %v5042_v2 = vpop.f32.mrf.mxu2  ;;  %v491_v56 = vrot.slane %v489_v48, 1 }
  0xe1   : > { %v802_v1 = vpop.f32.mrf.mxu1  ;;  %v5044_v8 = vpop.f32.mrf.mxu0  ;;  %v1492_v19 = vsel %vm1489_vm4, %v1490_v9, %v1491_v0 }
  0xe2   : > { %v1295_v6 = vrot.slane %v1212_v62, 1  ;;  %v803_v4 = vadd.f32 %v802_v1, %v635_v7  ;;  %v1609_v21 = vmax.f32 %v1409_v57, %v1492_v19 }
  0xe4   : > { %v1296_v15 = vsel %vm898_vm2, %v1293_v47, %v1295_v6  ;;  %v1129_v18 = vadd.f32 %v1035_v11, %v803_v4  ;;  %3836 = vmatmul.msk.bf16.gmra.mxu1 %vm551_vm3, %v4978_v49  ;;  %3810 = vmatmul.msk.bf16.gmra.mxu0 %vm551_vm3, %v484_v12  ;;  %v1689_v34 = vrot.slane %v1609_v21, 1  ;;  %v485_v47 = vshrl.u32 %v5034_v51, 16 }
  0xe5   : > { %v1411_v22 = vmax.f32 %v1211_v42, %v1296_v15  ;;  %3871 = vmatmul.msk.bf16.gmra.mxu2 %vm551_vm3, %v925_v10 }
  0xe6   : > { %v1173_v7 = vadd.f32 %v5011_v20, %v1129_v18 }
  0xe7   : > { %v1493_v23 = vrot.slane %v1411_v22, 2 }
  0xe8   : > { %v1213_v24 = vmax.f32 %v1173_v7, 0.0  ;;  %v5056_v11 = vpop.f32.mrf.mxu2  ;;  %v5094_v7 = vld [vmem:[%s4875_s17 + $0x78] sm:$0xff] }
  0xe9   : > { %v1494_v26 = vsel %vm1489_vm4, %v1491_v0, %v1493_v23  ;;  %v804_v28 = vpop.f32.mrf.mxu1  ;;  %v5062_v33 = vpop.f32.mrf.mxu0  ;;  %v927_v0 = vsel %vm898_vm2, %v924_v58, %v926_v43 }
  0xea   : > { %v1610_v29 = vmax.f32 %v1410_v55, %v1494_v26  ;;  %v1297_v30 = vrot.slane %v1213_v24, 1  ;;  %v805_v49 = vadd.f32 %v804_v28, %v5003_v16  ;;  %v487_v55 = vor.u32 %v485_v47, %v483_v5 }
  0xec   : > { %v1690_v35 = vrot.slane %v1610_v29, 1  ;;  %v1298_v37 = vsel %vm898_vm2, %v1295_v6, %v1297_v30  ;;  %v1130_v38 = vadd.f32 %v5017_v27, %v805_v49  ;;  %v492_v1 = vsel %vm376_vm1, %v487_v55, %v491_v56 }
  0xed   : > { %v1412_v39 = vmax.f32 %v1212_v62, %v1298_v37  ;;  %v928_v49 = vrot.slane %v5094_v7, 1  ;;  %v497_v37 = vshll.u32 %v5094_v7, 16 }
  0xee   : > { %v1691_v41 = vsel %vm898_vm2, %v1689_v34, %v1690_v35  ;;  %v1174_v42 = vadd.f32 %v5011_v20, %v1130_v38 }
  0xef   : > { %v1808_v45 = vmax.f32 %v1609_v21, %v1691_v41  ;;  %v1495_v16 = vrot.slane %v1412_v39, 2 }
  0xf0   : > { %v1214_v36 = vmax.f32 %v1174_v42, 0.0  ;;  %v5073_v54 = vpop.f32.mrf.mxu2 }
  0xf1   : > { %1849 = vst.msk [vmem:[#allocation2] sm:$0xff] %vm1848_vm5, %v1808_v45  ;;  %v1496_v52 = vsel %vm1489_vm4, %v1493_v23, %v1495_v16  ;;  %v807_v27 = vpop.f32.mrf.mxu1  ;;  %v5076_v62 = vpop.f32.mrf.mxu0  ;;  %v499_v45 = vrot.slane %v497_v37, 1 }
  0xf2   : > { %v1611_v57 = vmax.f32 %v1411_v22, %v1496_v52  ;;  %v1299_v59 = vrot.slane %v1214_v36, 1  ;;  %v808_v61 = vadd.f32 %v807_v27, %v5020_v32  ;;  %v929_v52 = vsel %vm898_vm2, %v926_v43, %v928_v49 }
  0xf4   : > { %v1692_v3 = vrot.slane %v1611_v57, 1  ;;  %v1300_v6 = vsel %vm898_vm2, %v1297_v30, %v1299_v59  ;;  %v1131_v4 = vadd.f32 %v5029_v44, %v808_v61  ;;  %3837 = vmatmul.msk.bf16.gmra.mxu1 %vm551_vm3, %v4993_v63  ;;  %3811 = vmatmul.msk.bf16.gmra.mxu0 %vm551_vm3, %v492_v1 }
  0xf5   : > { %v1413_v5 = vmax.f32 %v1213_v24, %v1300_v6  ;;  %3872 = vmatmul.msk.bf16.gmra.mxu2 %vm551_vm3, %v927_v0 }
  0xf6   : > { %v1693_v32 = vsel %vm898_vm2, %v1690_v35, %v1692_v3  ;;  %v1175_v9 = vadd.f32 %v5011_v20, %v1131_v4 }
  0xf7   : > { %v1809_v58 = vmax.f32 %v1610_v29, %v1693_v32  ;;  %v1497_v10 = vrot.slane %v1413_v5, 2  ;;  %v5128_v32 = vld [vmem:[%s4875_s17 + $0x80] sm:$0xff] }
  0xf8   : > { %v1215_v12 = vmax.f32 %v1175_v9, 0.0  ;;  %v5090_v18 = vpop.f32.mrf.mxu2 }
  0xf9   : > { %1850 = vst.msk [vmem:[#allocation2 + $0x8] sm:$0xff] %vm1848_vm5, %v1809_v58  ;;  %v1498_v44 = vsel %vm1489_vm4, %v1495_v16, %v1497_v10  ;;  %v809_v15 = vpop.f32.mrf.mxu1  ;;  %v5096_v23 = vpop.f32.mrf.mxu0 }
  0xfa   : > { %v1612_v63 = vmax.f32 %v1412_v39, %v1498_v44  ;;  %v1301_v19 = vrot.slane %v1215_v12, 1  ;;  %v810_v22 = vadd.f32 %v809_v15, %v5031_v50  ;;  %v493_v50 = vshrl.u32 %v5060_v31, 16 }
  0xfc   : > { %v1694_v21 = vrot.slane %v1612_v63, 1  ;;  %v1302_v24 = vsel %vm898_vm2, %v1299_v59, %v1301_v19  ;;  %v1132_v26 = vadd.f32 %v5042_v2, %v810_v22  ;;  %v495_v42 = vor.u32 %v493_v50, %v491_v56 }
  0xfd   : > { %v1414_v28 = vmax.f32 %v1214_v36, %v1302_v24  ;;  %v505_v24 = vshll.u32 %v5128_v32, 16 }
  0xfe   : > { %v1695_v29 = vsel %vm898_vm2, %v1692_v3, %v1694_v21  ;;  %v1176_v30 = vadd.f32 %v5011_v20, %v1132_v26  ;;  %v500_v27 = vsel %vm376_vm1, %v495_v42, %v499_v45 }
  0xff   : > { %v1810_v34 = vmax.f32 %v1611_v57, %v1695_v29  ;;  %v1499_v35 = vrot.slane %v1414_v28, 2 }
 0x100   : > { %v1216_v38 = vmax.f32 %v1176_v30, 0.0  ;;  %v5107_v2 = vpop.f32.mrf.mxu2 }
 0x101   : > { %1851 = vst.msk [vmem:[#allocation2 + $0x10] sm:$0xff] %vm1848_vm5, %v1810_v34  ;;  %v1500_v39 = vsel %vm1489_vm4, %v1497_v10, %v1499_v35  ;;  %v812_v41 = vpop.f32.mrf.mxu1  ;;  %v5110_v36 = vpop.f32.mrf.mxu0  ;;  %v507_v34 = vrot.slane %v505_v24, 1 }
 0x102   : > { %v1613_v16 = vmax.f32 %v1413_v5, %v1500_v39  ;;  %v1303_v47 = vrot.slane %v1216_v38, 1  ;;  %v813_v48 = vadd.f32 %v812_v41, %v5044_v8 }
 0x104   : > { %v1696_v55 = vrot.slane %v1613_v16, 1  ;;  %v1304_v57 = vsel %vm898_vm2, %v1301_v19, %v1303_v47  ;;  %v1133_v59 = vadd.f32 %v5056_v11, %v813_v48  ;;  %3838 = vmatmul.msk.bf16.gmra.mxu1 %vm551_vm3, %v5006_v17  ;;  %3812 = vmatmul.msk.bf16.gmra.mxu0 %vm551_vm3, %v500_v27  ;;  %v930_v19 = vrot.slane %v5128_v32, 1 }
 0x105   : > { %v1415_v56 = vmax.f32 %v1215_v12, %v1304_v57  ;;  %3873 = vmatmul.msk.bf16.gmra.mxu2 %vm551_vm3, %v929_v52 }
 0x106   : > { %v1697_v8 = vsel %vm898_vm2, %v1694_v21, %v1696_v55  ;;  %v1177_v61 = vadd.f32 %v5011_v20, %v1133_v59  ;;  %v931_v39 = vsel %vm898_vm2, %v928_v49, %v930_v19 }
 0x107   : > { %v1811_v43 = vmax.f32 %v1612_v63, %v1697_v8  ;;  %v1501_v0 = vrot.slane %v1415_v56, 2  ;;  %v5162_v8 = vld [vmem:[%s4875_s17 + $0x88] sm:$0xff] }
 0x108   : > { %v1217_v1 = vmax.f32 %v1177_v61, 0.0  ;;  %v5124_v6 = vpop.f32.mrf.mxu2 }
 0x109   : > { %1852 = vst.msk [vmem:[#allocation2 + $0x18] sm:$0xff] %vm1848_vm5, %v1811_v43  ;;  %v1502_v11 = vsel %vm1489_vm4, %v1499_v35, %v1501_v0  ;;  %v814_v3 = vpop.f32.mrf.mxu1  ;;  %v5130_v9 = vpop.f32.mrf.mxu0 }
 0x10a   : > { %v1614_v17 = vmax.f32 %v1414_v28, %v1502_v11  ;;  %v1305_v4 = vrot.slane %v1217_v1, 1  ;;  %v815_v5 = vadd.f32 %v814_v3, %v5062_v33  ;;  %v501_v33 = vshrl.u32 %v5094_v7, 16 }
 0x10c   : > { %v1698_v58 = vrot.slane %v1614_v17, 1  ;;  %v1306_v10 = vsel %vm898_vm2, %v1303_v47, %v1305_v4  ;;  %v1134_v12 = vadd.f32 %v5073_v54, %v815_v5  ;;  %v503_v30 = vor.u32 %v501_v33, %v499_v45 }
 0x10d   : > { %v1416_v44 = vmax.f32 %v1216_v38, %v1306_v10  ;;  %v513_v10 = vshll.u32 %v5162_v8, 16 }
 0x10e   : > { %v1699_v15 = vsel %vm898_vm2, %v1696_v55, %v1698_v58  ;;  %v1178_v63 = vadd.f32 %v5011_v20, %v1134_v12  ;;  %v508_v41 = vsel %vm376_vm1, %v503_v30, %v507_v34 }
 0x10f   : > { %v1812_v22 = vmax.f32 %v1613_v16, %v1699_v15  ;;  %v1503_v21 = vrot.slane %v1416_v44, 2 }
 0x110   : > { %v1218_v26 = vmax.f32 %v1178_v63, 0.0  ;;  %v5141_v54 = vpop.f32.mrf.mxu2 }
 0x111   : > { %1853 = vst.msk [vmem:[#allocation2 + $0x20] sm:$0xff] %vm1848_vm5, %v1812_v22  ;;  %v1504_v28 = vsel %vm1489_vm4, %v1501_v0, %v1503_v21  ;;  %v817_v29 = vpop.f32.mrf.mxu1  ;;  %v5144_v38 = vpop.f32.mrf.mxu0  ;;  %v515_v22 = vrot.slane %v513_v10, 1 }
 0x112   : > { %v1615_v35 = vmax.f32 %v1415_v56, %v1504_v28  ;;  %v1307_v50 = vrot.slane %v1218_v26, 1  ;;  %v818_v37 = vadd.f32 %v817_v29, %v5076_v62 }
 0x114   : > { %v1700_v42 = vrot.slane %v1615_v35, 1  ;;  %v1308_v16 = vsel %vm898_vm2, %v1305_v4, %v1307_v50  ;;  %v1135_v47 = vadd.f32 %v5090_v18, %v818_v37  ;;  %3839 = vmatmul.msk.bf16.gmra.mxu1 %vm551_vm3, %v5034_v51  ;;  %3813 = vmatmul.msk.bf16.gmra.mxu0 %vm551_vm3, %v508_v41  ;;  %v932_v4 = vrot.slane %v5162_v8, 1 }
 0x115   : > { %v1417_v45 = vmax.f32 %v1217_v1, %v1308_v16  ;;  %3874 = vmatmul.msk.bf16.gmra.mxu2 %vm551_vm3, %v931_v39 }
 0x116   : > { %v1701_v62 = vsel %vm898_vm2, %v1698_v58, %v1700_v42  ;;  %v1179_v48 = vadd.f32 %v5011_v20, %v1135_v47  ;;  %v933_v28 = vsel %vm898_vm2, %v930_v19, %v932_v4 }
 0x117   : > { %v1813_v49 = vmax.f32 %v1614_v17, %v1701_v62  ;;  %v1505_v52 = vrot.slane %v1417_v45, 2 }
 0x118   : > { %v1219_v27 = vmax.f32 %v1179_v48, 0.0  ;;  %v5158_v57 = vpop.f32.mrf.mxu2 }
 0x119   : > { %1854 = vst.msk [vmem:[#allocation2 + $0x28] sm:$0xff] %vm1848_vm5, %v1813_v49  ;;  %v1506_v18 = vsel %vm1489_vm4, %v1503_v21, %v1505_v52  ;;  %v819_v55 = vpop.f32.mrf.mxu1  ;;  %v5164_v61 = vpop.f32.mrf.mxu0 }
 0x11a   : > { %v1616_v51 = vmax.f32 %v1416_v44, %v1506_v18  ;;  %v1309_v59 = vrot.slane %v1219_v27, 1  ;;  %v820_v56 = vadd.f32 %v819_v55, %v5096_v23  ;;  %v509_v23 = vshrl.u32 %v5128_v32, 16 }
 0x11c   : > { %v1702_v43 = vrot.slane %v1616_v51, 1  ;;  %v1310_v0 = vsel %vm898_vm2, %v1307_v50, %v1309_v59  ;;  %v1136_v1 = vadd.f32 %v5107_v2, %v820_v56  ;;  %v511_v63 = vor.u32 %v509_v23, %v507_v34 }
 0x11d   : > { %v1418_v11 = vmax.f32 %v1218_v26, %v1310_v0  ;;  %v934_v56 = vrot.slane %v4882_v13, 1 }
 0x11e   : > { %v1703_v3 = vsel %vm898_vm2, %v1700_v42, %v1702_v43  ;;  %v1180_v17 = vadd.f32 %v5011_v20, %v1136_v1  ;;  %v516_v29 = vsel %vm376_vm1, %v511_v63, %v515_v22 }
 0x11f   : > { %v1814_v5 = vmax.f32 %v1615_v35, %v1703_v3  ;;  %v1507_v58 = vrot.slane %v1418_v11, 2  ;;  %v935_v23 = vsel %vm898_vm2, %v932_v4, %v934_v56 }
 0x120   : > { %v1220_v12 = vmax.f32 %v1180_v17, 0.0  ;;  %v5175_v2 = vpop.f32.mrf.mxu2 }
 0x121   : > { %1855 = vst.msk [vmem:[#allocation2 + $0x30] sm:$0xff] %vm1848_vm5, %v1814_v5  ;;  %v1508_v44 = vsel %vm1489_vm4, %v1505_v52, %v1507_v58  ;;  %v822_v15 = vpop.f32.mrf.mxu1  ;;  %v5178_v26 = vpop.f32.mrf.mxu0 }
 0x122   : > { %v1617_v21 = vmax.f32 %v1417_v45, %v1508_v44  ;;  %v1311_v33 = vrot.slane %v1220_v12, 1  ;;  %v823_v24 = vadd.f32 %v822_v15, %v5110_v36 }
 0x124   : > { %v1704_v30 = vrot.slane %v1617_v21, 1  ;;  %v1312_v35 = vsel %vm898_vm2, %v1309_v59, %v1311_v33  ;;  %v1137_v50 = vadd.f32 %v5124_v6, %v823_v24  ;;  %3840 = vmatmul.msk.bf16.gmra.mxu1 %vm551_vm3, %v5060_v31  ;;  %3814 = vmatmul.msk.bf16.gmra.mxu0 %vm551_vm3, %v516_v29 }
 0x125   : > { %v1419_v34 = vmax.f32 %v1219_v27, %v1312_v35  ;;  %3875 = vmatmul.msk.bf16.gmra.mxu2 %vm551_vm3, %v933_v28 }
 0x126   : > { %v1705_v37 = vsel %vm898_vm2, %v1702_v43, %v1704_v30  ;;  %v1181_v36 = vadd.f32 %v5011_v20, %v1137_v50  ;;  %v517_v43 = vshrl.u32 %v5162_v8, 16 }
 0x127   : > { %v1815_v19 = vmax.f32 %v1616_v51, %v1705_v37  ;;  %v1509_v39 = vrot.slane %v1419_v34, 2 }
 0x128   : > { %v1221_v41 = vmax.f32 %v1181_v36, 0.0  ;;  %v5192_v16 = vpop.f32.mrf.mxu2 }
 0x129   : > { %1856 = vst.msk [vmem:[#allocation2 + $0x38] sm:$0xff] %vm1848_vm5, %v1815_v19  ;;  %v1510_v42 = vsel %vm1489_vm4, %v1507_v58, %v1509_v39  ;;  %v824_v6 = vpop.f32.mrf.mxu1  ;;  %v5195_v62 = vpop.f32.mrf.mxu0 }
 0x12a   : > { %v1618_v31 = vmax.f32 %v1418_v11, %v1510_v42  ;;  %v1313_v47 = vrot.slane %v1221_v41, 1  ;;  %v825_v45 = vadd.f32 %v824_v6, %v5130_v9 }
 0x12c   : > { %v1706_v48 = vrot.slane %v1618_v31, 1  ;;  %v1314_v49 = vsel %vm898_vm2, %v1311_v33, %v1313_v47  ;;  %v1138_v52 = vadd.f32 %v5141_v54, %v825_v45  ;;  %v519_v54 = vor.u32 %v517_v43, %v515_v22 }
 0x12d   : > { %v1420_v27 = vmax.f32 %v1220_v12, %v1314_v49 }
 0x12e   : > { %v1707_v18 = vsel %vm898_vm2, %v1704_v30, %v1706_v48  ;;  %v1182_v55 = vadd.f32 %v5011_v20, %v1138_v52  ;;  %v524_v13 = vsel %vm376_vm1, %v519_v54, %v4898_v25 }
 0x12f   : > { %v1816_v51 = vmax.f32 %v1617_v21, %v1707_v18  ;;  %v1511_v59 = vrot.slane %v1420_v27, 2 }
 0x130   : > { %v1222_v0 = vmax.f32 %v1182_v55, 0.0  ;;  %v5205_v11 = vpop.f32.mrf.mxu2 }
 0x131   : > { %1857 = vst.msk [vmem:[#allocation2 + $0x40] sm:$0xff] %vm1848_vm5, %v1816_v51  ;;  %v1512_v9 = vsel %vm1489_vm4, %v1509_v39, %v1511_v59  ;;  %v827_v1 = vpop.f32.mrf.mxu1  ;;  %v5208_v58 = vpop.f32.mrf.mxu0 }
 0x132   : > { %v1619_v3 = vmax.f32 %v1419_v34, %v1512_v9  ;;  %v1315_v17 = vrot.slane %v1222_v0, 1  ;;  %v828_v5 = vadd.f32 %v827_v1, %v5144_v38 }
 0x134   : > { %v1708_v10 = vrot.slane %v1619_v3, 1  ;;  %v1316_v12 = vsel %vm898_vm2, %v1313_v47, %v1315_v17  ;;  %v1139_v44 = vadd.f32 %v5158_v57, %v828_v5  ;;  %3841 = vmatmul.msk.bf16.gmra.mxu1 %vm551_vm3, %v5094_v7  ;;  %3815 = vmatmul.msk.bf16.gmra.mxu0 %vm551_vm3, %v524_v13 }
 0x135   : > { %v1421_v15 = vmax.f32 %v1221_v41, %v1316_v12  ;;  %3876 = vmatmul.msk.bf16.gmra.mxu2 %vm551_vm3, %v935_v23  ;;  %v936_v41 = vrot.slane %v4885_v14, 1 }
 0x136   : > { %v1709_v38 = vsel %vm898_vm2, %v1706_v48, %v1708_v10  ;;  %v1183_v63 = vadd.f32 %v5011_v20, %v1139_v44 }
 0x137   : > { %v1817_v4 = vmax.f32 %v1618_v31, %v1709_v38  ;;  %v1513_v22 = vrot.slane %v1421_v15, 2  ;;  %v937_v49 = vsel %vm898_vm2, %v934_v56, %v936_v41 }
 0x138   : > { %v1223_v25 = vmax.f32 %v1183_v63, 0.0  ;;  %v1070_v33 = vpop.f32.mrf.mxu2 }
 0x139   : > { %1858 = vst.msk [vmem:[#allocation2 + $0x48] sm:$0xff] %vm1848_vm5, %v1817_v4  ;;  %v1514_v21 = vsel %vm1489_vm4, %v1511_v59, %v1513_v22  ;;  %v829_v57 = vpop.f32.mrf.mxu1  ;;  %v5224_v29 = vpop.f32.mrf.mxu0 }
 0x13a   : > { %v1620_v24 = vmax.f32 %v1420_v27, %v1514_v21  ;;  %v1317_v7 = vrot.slane %v1223_v25, 1  ;;  %v830_v28 = vadd.f32 %v829_v57, %v5164_v61 }
 0x13c   : > { %v1710_v30 = vrot.slane %v1620_v24, 1  ;;  %v1318_v35 = vsel %vm898_vm2, %v1315_v17, %v1317_v7  ;;  %v1140_v50 = vadd.f32 %v5175_v2, %v830_v28 }
 0x13d   : > { %v1422_v34 = vmax.f32 %v1222_v0, %v1318_v35 }
 0x13e   : > { %v1711_v37 = vsel %vm898_vm2, %v1708_v10, %v1710_v30  ;;  %v1184_v36 = vadd.f32 %v5011_v20, %v1140_v50 }
 0x13f   : > { %v1818_v19 = vmax.f32 %v1619_v3, %v1711_v37  ;;  %v1515_v39 = vrot.slane %v1422_v34, 2 }
 0x140   : > { %v1224_v42 = vmax.f32 %v1184_v36, 0.0  ;;  %v5233_v31 = vpop.f32.mrf.mxu2 }
 0x141   : > { %1859 = vst.msk [vmem:[#allocation2 + $0x50] sm:$0xff] %vm1848_vm5, %v1818_v19  ;;  %v1516_v61 = vsel %vm1489_vm4, %v1513_v22, %v1515_v39  ;;  %v832_v6 = vpop.f32.mrf.mxu1  ;;  %v5236_v48 = vpop.f32.mrf.mxu0 }
 0x142   : > { %v1621_v47 = vmax.f32 %v1421_v15, %v1516_v61  ;;  %v1319_v45 = vrot.slane %v1224_v42, 1  ;;  %v833_v2 = vadd.f32 %v832_v6, %v5178_v26 }
 0x144   : > { %v1712_v52 = vrot.slane %v1621_v47, 1  ;;  %v1320_v27 = vsel %vm898_vm2, %v1317_v7, %v1319_v45  ;;  %v1141_v14 = vadd.f32 %v5192_v16, %v833_v2  ;;  %3842 = vmatmul.msk.bf16.gmra.mxu1 %vm551_vm3, %v5128_v32 }
 0x145   : > { %v1423_v18 = vmax.f32 %v1223_v25, %v1320_v27  ;;  %3877 = vmatmul.msk.bf16.gmra.mxu2 %vm551_vm3, %v937_v49 }
 0x146   : > { %v1713_v55 = vsel %vm898_vm2, %v1710_v30, %v1712_v52  ;;  %v1185_v51 = vadd.f32 %v5011_v20, %v1141_v14 }
 0x147   : > { %v1819_v26 = vmax.f32 %v1620_v24, %v1713_v55  ;;  %v1517_v59 = vrot.slane %v1423_v18, 2 }
 0x148   : > { %v1225_v43 = vmax.f32 %v1185_v51, 0.0  ;;  %v1075_v9 = vpop.f32.mrf.mxu2 }
 0x149   : > { %1860 = vst.msk [vmem:[#allocation2 + $0x58] sm:$0xff] %vm1848_vm5, %v1819_v26  ;;  %v1518_v56 = vsel %vm1489_vm4, %v1515_v39, %v1517_v59  ;;  %v834_v0 = vpop.f32.mrf.mxu1  ;;  %v5249_v54 = vpop.f32.mrf.mxu0 }
 0x14a   : > { %v1622_v16 = vmax.f32 %v1422_v34, %v1518_v56  ;;  %v1321_v1 = vrot.slane %v1225_v43, 1  ;;  %v835_v32 = vadd.f32 %v834_v0, %v5195_v62 }
 0x14c   : > { %v1714_v3 = vrot.slane %v1622_v16, 1  ;;  %v1322_v17 = vsel %vm898_vm2, %v1319_v45, %v1321_v1  ;;  %v1142_v5 = vadd.f32 %v5205_v11, %v835_v32 }
 0x14d   : > { %v1424_v23 = vmax.f32 %v1224_v42, %v1322_v17 }
 0x14e   : > { %v1715_v13 = vsel %vm898_vm2, %v1712_v52, %v1714_v3  ;;  %v1186_v10 = vadd.f32 %v5011_v20, %v1142_v5 }
 0x14f   : > { %v1820_v12 = vmax.f32 %v1621_v47, %v1715_v13  ;;  %v1519_v44 = vrot.slane %v1424_v23, 2 }
 0x150   : > { %v1226_v15 = vmax.f32 %v1186_v10, 0.0  ;;  %v1077_v63 = vpop.f32.mrf.mxu2 }
 0x151   : > { %1861 = vst.msk [vmem:[#allocation2 + $0x60] sm:$0xff] %vm1848_vm5, %v1820_v12  ;;  %v1520_v38 = vsel %vm1489_vm4, %v1517_v59, %v1519_v44  ;;  %v837_v62 = vpop.f32.mrf.mxu1  ;;  %v5261_v24 = vpop.f32.mrf.mxu0 }
 0x152   : > { %v1623_v4 = vmax.f32 %v1423_v18, %v1520_v38  ;;  %v1323_v22 = vrot.slane %v1226_v15, 1  ;;  %v838_v25 = vadd.f32 %v837_v62, %v5208_v58 }
 0x154   : > { %v1716_v21 = vrot.slane %v1623_v4, 1  ;;  %v1324_v11 = vsel %vm898_vm2, %v1321_v1, %v1323_v22  ;;  %v1143_v57 = vadd.f32 %v1070_v33, %v838_v25  ;;  %3843 = vmatmul.msk.bf16.gmra.mxu1 %vm551_vm3, %v5162_v8 }
 0x155   : > { %v1425_v7 = vmax.f32 %v1225_v43, %v1324_v11  ;;  %3878 = vmatmul.msk.bf16.gmra.mxu2 %vm551_vm3, %v936_v41  ;;  %v4709_v43 = vld [vmem:[%s4875_s17 + $0x90] sm:$0xff] }
 0x156   : > { %v1717_v28 = vsel %vm898_vm2, %v1714_v3, %v1716_v21  ;;  %v1187_v30 = vadd.f32 %v5011_v20, %v1143_v57 }
 0x157   : > { %v1821_v35 = vmax.f32 %v1622_v16, %v1717_v28  ;;  %v1521_v50 = vrot.slane %v1425_v7, 2 }
 0x158   : > { %v1227_v34 = vmax.f32 %v1187_v30, 0.0  ;;  %v1080_v37 = vpop.f32.mrf.mxu2 }
 0x159   : > { %1862 = vst.msk [vmem:[#allocation2 + $0x68] sm:$0xff] %vm1848_vm5, %v1821_v35  ;;  %v1522_v58 = vsel %vm1489_vm4, %v1519_v44, %v1521_v50  ;;  %v839_v33 = vpop.f32.mrf.mxu1  ;;  %v5273_v45 = vpop.f32.mrf.mxu0 }
 0x15a   : > { %v1624_v36 = vmax.f32 %v1424_v23, %v1522_v58  ;;  %v1325_v8 = vrot.slane %v1227_v34, 1  ;;  %v840_v19 = vadd.f32 %v839_v33, %v5224_v29  ;;  %v4710_v58 = vld [vmem:[%s4875_s17 + $0x98] sm:$0xff] }
 0x15c   : > { %v1718_v39 = vrot.slane %v1624_v36, 1  ;;  %v1326_v42 = vsel %vm898_vm2, %v1323_v22, %v1325_v8  ;;  %v1144_v61 = vadd.f32 %v5233_v31, %v840_v19 }
 0x15d   : > { %v1426_v6 = vmax.f32 %v1226_v15, %v1326_v42 }
 0x15e   : > { %v1719_v41 = vsel %vm898_vm2, %v1716_v21, %v1718_v39  ;;  %v1188_v47 = vadd.f32 %v5011_v20, %v1144_v61 }
 0x15f   : > { %v1822_v2 = vmax.f32 %v1623_v4, %v1719_v41  ;;  %v1523_v49 = vrot.slane %v1426_v6, 2 }
 0x160   : > { %v1228_v52 = vmax.f32 %v1188_v47, 0.0  ;;  %v1082_v14 = vpop.f32.mrf.mxu2 }
 0x161   : > { %1863 = vst.msk [vmem:[#allocation2 + $0x70] sm:$0xff] %vm1848_vm5, %v1822_v2  ;;  %v1524_v29 = vsel %vm1489_vm4, %v1521_v50, %v1523_v49  ;;  %v842_v27 = vpop.f32.mrf.mxu1  ;;  %v685_v17 = vpop.f32.mrf.mxu0 }
 0x162   : > { %v1625_v18 = vmax.f32 %v1425_v7, %v1524_v29  ;;  %v1327_v55 = vrot.slane %v1228_v52, 1  ;;  %v843_v31 = vadd.f32 %v842_v27, %v5236_v48 }
 0x164   : > { %v1720_v51 = vrot.slane %v1625_v18, 1  ;;  %v1328_v26 = vsel %vm898_vm2, %v1325_v8, %v1327_v55  ;;  %v1145_v59 = vadd.f32 %v1075_v9, %v843_v31  ;;  %3844 = vmatmul.msk.bf16.gmra.mxu1 %vm551_vm3, %v4709_v43 }
 0x165   : > { %v1427_v56 = vmax.f32 %v1227_v34, %v1328_v26 }
 0x166   : > { %v1721_v0 = vsel %vm898_vm2, %v1718_v39, %v1720_v51  ;;  %v1189_v16 = vadd.f32 %v5011_v20, %v1145_v59  ;;  %v4776_v59 = vmov 0  }
 0x167   : > { %v1823_v1 = vmax.f32 %v1624_v36, %v1721_v0  ;;  %v1525_v32 = vrot.slane %v1427_v56, 2  ;;  %v5310_v43 = vrot.slane %v4776_v59, 1 }
 0x168   : > { %v1229_v3 = vmax.f32 %v1189_v16, 0.0  ;;  %v5285_v23 = vpop.f32.mrf.mxu2 }
 0x169   : > { %1864 = vst.msk [vmem:[#allocation2 + $0x78] sm:$0xff] %vm1848_vm5, %v1823_v1  ;;  %v1526_v48 = vsel %vm1489_vm4, %v1523_v49, %v1525_v32  ;;  %v844_v5 = vpop.f32.mrf.mxu1  ;;  %v687_v30 = vpop.f32.mrf.mxu0  ;;  %2129 = vrot.lane.b32.xlu2 %v5310_v43, %s4777_s14 }
 0x16a   : > { %v1626_v9 = vmax.f32 %v1426_v6, %v1526_v48  ;;  %v1329_v13 = vrot.slane %v1229_v3, 1  ;;  %v845_v10 = vadd.f32 %v844_v5, %v5249_v54 }
 0x16c   : > { %v1722_v12 = vrot.slane %v1626_v9, 1  ;;  %v1330_v44 = vsel %vm898_vm2, %v1327_v55, %v1329_v13  ;;  %v1146_v15 = vadd.f32 %v1077_v63, %v845_v10 }
 0x16d   : > { %v1428_v38 = vmax.f32 %v1228_v52, %v1330_v44 }
 0x16e   : > { %v1723_v62 = vsel %vm898_vm2, %v1720_v51, %v1722_v12  ;;  %v1190_v4 = vadd.f32 %v5011_v20, %v1146_v15  ;;  %v1895_v15 = vld [vmem:[#allocation2 + $0x28] ss:$5 sm:$0xff] }
 0x16f   : > { %v1824_v22 = vmax.f32 %v1625_v18, %v1723_v62  ;;  %v1527_v25 = vrot.slane %v1428_v38, 2 }
 0x170   : > { %v1230_v21 = vmax.f32 %v1190_v4, 0.0  ;;  %v5293_v7 = vpop.f32.mrf.mxu2 }
 0x171   : > { %1865 = vst.msk [vmem:[#allocation2 + $0x80] sm:$0xff] %vm1848_vm5, %v1824_v22  ;;  %v1528_v11 = vsel %vm1489_vm4, %v1525_v32, %v1527_v25  ;;  %v847_v57 = vpop.f32.mrf.mxu1  ;;  %v690_v27 = vpop.f32.mrf.mxu0 }
 0x172   : > { %v1627_v54 = vmax.f32 %v1427_v56, %v1528_v11  ;;  %v1331_v28 = vrot.slane %v1230_v21, 1  ;;  %v848_v63 = vadd.f32 %v847_v57, %v5261_v24 }
 0x174   : > { %v1724_v35 = vrot.slane %v1627_v54, 1  ;;  %v1332_v50 = vsel %vm898_vm2, %v1329_v13, %v1331_v28  ;;  %v1147_v34 = vadd.f32 %v1080_v37, %v848_v63  ;;  %3845 = vmatmul.msk.bf16.gmra.mxu1 %vm551_vm3, %v4710_v58 }
 0x175   : > { %v1429_v33 = vmax.f32 %v1229_v3, %v1332_v50 }
 0x176   : > { %v1725_v36 = vsel %vm898_vm2, %v1722_v12, %v1724_v35  ;;  %v1191_v8 = vadd.f32 %v5011_v20, %v1147_v34 }
 0x177   : > { %v1825_v19 = vmax.f32 %v1626_v9, %v1725_v36  ;;  %v1529_v39 = vrot.slane %v1429_v33, 2  ;;  %v1911_v9 = vld [vmem:[#allocation2 + $0x2d] ss:$5 sm:$0xff] }
 0x178   : > { %v1231_v42 = vmax.f32 %v1191_v8, 0.0  ;;  %v5303_v6 = vpop.f32.mrf.mxu2  ;;  %v1925_v4 = vmax.f32 %v1895_v15, %v1911_v9  ;;  %v1933_v36 = vld [vmem:[#allocation2 + $0xa] ss:$5 sm:$0xff] }
 0x179   : > { %1866 = vst.msk [vmem:[#allocation2 + $0x88] sm:$0xff] %vm1848_vm5, %v1825_v19  ;;  %v1530_v24 = vsel %vm1489_vm4, %v1527_v25, %v1529_v39  ;;  %v849_v61 = vpop.f32.mrf.mxu1 }
 0x17a   : > { %v1628_v41 = vmax.f32 %v1428_v38, %v1530_v24  ;;  %v1333_v37 = vrot.slane %v1231_v42, 1  ;;  %v850_v47 = vadd.f32 %v849_v61, %v5273_v45  ;;  %v1909_v38 = vld [vmem:[#allocation2 + $0x5] ss:$5 sm:$0xff]  ;;  %v1913_v61 = vld [vmem:[#allocation2 + $0x55] ss:$5 sm:$0xff] }
 0x17c   : > { %v1726_v2 = vrot.slane %v1628_v41, 1  ;;  %v1334_v49 = vsel %vm898_vm2, %v1331_v28, %v1333_v37  ;;  %v1148_v52 = vadd.f32 %v1082_v14, %v850_v47  ;;  %v1935_v28 = vld [vmem:[#allocation2 + $0x32] ss:$5 sm:$0xff] }
 0x17d   : > { %v1430_v29 = vmax.f32 %v1230_v21, %v1334_v49  ;;  %v1893_v21 = vld [vmem:[#allocation2] ss:$5 sm:$0xff]  ;;  %v1949_v34 = vmax.f32 %v1925_v4, %v1935_v28 }
 0x17e   : > { %v1727_v18 = vsel %vm898_vm2, %v1724_v35, %v1726_v2  ;;  %v1192_v55 = vadd.f32 %v5011_v20, %v1148_v52 }
 0x17f   : > { %v1826_v31 = vmax.f32 %v1627_v54, %v1727_v18  ;;  %v1531_v51 = vrot.slane %v1430_v29, 2  ;;  %v1924_v54 = vmax.f32 %v1893_v21, %v1909_v38 }
 0x180   : > { %v1232_v26 = vmax.f32 %v1192_v55, 0.0  ;;  %v5316_v1 = vpop.f32.mrf.mxu2 }
 0x181   : > { %1867 = vst.msk [vmem:[#allocation2 + $0x90] sm:$0xff] %vm1848_vm5, %v1826_v31  ;;  %v1532_v45 = vsel %vm1489_vm4, %v1529_v39, %v1531_v51  ;;  %v852_v56 = vpop.f32.mrf.mxu1  ;;  %v1948_v39 = vmax.f32 %v1924_v54, %v1933_v36 }
 0x182   : > { %v1629_v0 = vmax.f32 %v1429_v33, %v1532_v45  ;;  %v1335_v14 = vrot.slane %v1232_v26, 1  ;;  %v853_v16 = vadd.f32 %v852_v56, %v685_v17  ;;  %v692_v17 = vpop.f32.mrf.mxu0 }
 0x183   : > { %v1956_v18 = vpack.c.bf16 %v1948_v39, %v1948_v39 }
 0x184   : > { %v1728_v32 = vrot.slane %v1629_v0, 1  ;;  %v1336_v3 = vsel %vm898_vm2, %v1333_v37, %v1335_v14  ;;  %v1149_v48 = vadd.f32 %v5285_v23, %v853_v16  ;;  %v1937_v16 = vld [vmem:[#allocation2 + $0x5a] ss:$5 sm:$0xff] }
 0x185   : > { %v1431_v5 = vmax.f32 %v1231_v42, %v1336_v3 }
 0x186   : > { %v1729_v13 = vsel %vm898_vm2, %v1726_v2, %v1728_v32  ;;  %v1193_v10 = vadd.f32 %v5011_v20, %v1149_v48 }
 0x187   : > { %v1827_v12 = vmax.f32 %v1628_v41, %v1729_v13  ;;  %v1533_v44 = vrot.slane %v1431_v5, 2  ;;  %v1957_v41 = vpack.c.bf16 %v1949_v34, %v1949_v34 }
 0x188   : > { %v1233_v62 = vmax.f32 %v1193_v10, 0.0  ;;  %v5326_v33 = vpop.f32.mrf.mxu2 }
 0x189   : > { %1868 = vst.msk [vmem:[#allocation2 + $0x98] sm:$0xff] %vm1848_vm5, %v1827_v12  ;;  %v1534_v22 = vsel %vm1489_vm4, %v1531_v51, %v1533_v44  ;;  %v854_v25 = vpop.f32.mrf.mxu1  ;;  %v1973_v45 = vunpack.c.l.b16 %v1957_v41 }
 0x18a   : > { %v1630_v23 = vmax.f32 %v1430_v29, %v1534_v22  ;;  %v1337_v11 = vrot.slane %v1233_v62, 1  ;;  %v855_v57 = vadd.f32 %v854_v25, %v687_v30  ;;  %v695_v47 = vpop.f32.mrf.mxu0  ;;  %v1897_v29 = vld [vmem:[#allocation2 + $0x50] ss:$5 sm:$0xff] }
 0x18b   : > { %v1926_v55 = vmax.f32 %v1897_v29, %v1913_v61 }
 0x18c   : > { %v1730_v63 = vrot.slane %v1630_v23, 1  ;;  %v1338_v35 = vsel %vm898_vm2, %v1335_v14, %v1337_v11  ;;  %v1150_v50 = vadd.f32 %v5293_v7, %v855_v57 }
 0x18d   : > { %v1432_v58 = vmax.f32 %v1232_v26, %v1338_v35 }
 0x18e   : > { %v1731_v8 = vsel %vm898_vm2, %v1728_v32, %v1730_v63  ;;  %v1194_v19 = vadd.f32 %v5011_v20, %v1150_v50  ;;  %v1972_v32 = vunpack.c.l.b16 %v1956_v18 }
 0x18f   : > { %v1828_v42 = vmax.f32 %v1629_v0, %v1731_v8  ;;  %v1535_v24 = vrot.slane %v1432_v58, 2 }
 0x190   : > { %v1234_v30 = vmax.f32 %v1194_v19, 0.0  ;;  %v1899_v13 = vld [vmem:[#allocation2 + $0x78] ss:$5 sm:$0xff]  ;;  %v5338_v12 = vpack.c.b16 %v1973_v45, %v1972_v32 }
 0x191   : > { %1869 = vst.msk [vmem:[#allocation2 + $0xa0] sm:$0xff] %vm1848_vm5, %v1828_v42  ;;  %v1536_v37 = vsel %vm1489_vm4, %v1533_v44, %v1535_v24  ;;  %v857_v7 = vpop.f32.mrf.mxu1 }
 0x192   : > { %v1631_v2 = vmax.f32 %v1431_v5, %v1536_v37  ;;  %v1339_v49 = vrot.slane %v1234_v30, 1  ;;  %v858_v52 = vadd.f32 %v857_v7, %v690_v27  ;;  %v5336_v5 = vpop.f32.mrf.mxu2  ;;  %v1950_v27 = vmax.f32 %v1926_v55, %v1937_v16  ;;  %v697_v21 = vpop.f32.mrf.mxu0 }
 0x193   : > { %v1987_v54 = vshll.u32 %v5338_v12, 16  ;;  %v1985_v35 = vshrl.u32 %v5338_v12, 16 }
 0x194   : > { %v1732_v31 = vrot.slane %v1631_v2, 1  ;;  %v1340_v51 = vsel %vm898_vm2, %v1337_v11, %v1339_v49  ;;  %v1151_v26 = vadd.f32 %v5303_v6, %v858_v52  ;;  %v1958_v25 = vpack.c.bf16 %v1950_v27, %v1950_v27 }
 0x195   : > { %v1433_v56 = vmax.f32 %v1233_v62, %v1340_v51  ;;  %v1989_v39 = vrot.slane %v1987_v54, 1  ;;  %v5357_v61 = vrot.slane %v1985_v35, 1  ;;  %v2040_v52 = vrot.slane %v1987_v54, 2 }
 0x196   : > { %v1733_v0 = vsel %vm898_vm2, %v1730_v63, %v1732_v31  ;;  %v1195_v14 = vadd.f32 %v5011_v20, %v1151_v26  ;;  %v1974_v8 = vunpack.c.l.b16 %v1958_v25 }
 0x197   : > { %v1829_v3 = vmax.f32 %v1630_v23, %v1733_v0  ;;  %v1537_v48 = vrot.slane %v1433_v56, 2  ;;  %v1990_v51 = vor.u32 %v1989_v39, %v1985_v35  ;;  %v2041_v32 = vor.u32 %v2040_v52, %v5357_v61 }
 0x198   : > { %v1235_v9 = vmax.f32 %v1195_v14, 0.0  ;;  %v1915_v10 = vld [vmem:[#allocation2 + $0x7d] ss:$5 sm:$0xff] }
 0x199   : > { %1870 = vst.msk [vmem:[#allocation2 + $0xa8] sm:$0xff] %vm1848_vm5, %v1829_v3  ;;  %v1538_v6 = vsel %vm1489_vm4, %v1535_v24, %v1537_v48  ;;  %v859_v44 = vpop.f32.mrf.mxu1  ;;  %v1927_v15 = vmax.f32 %v1899_v13, %v1915_v10  ;;  %v1939_v4 = vld [vmem:[#allocation2 + $0x82] ss:$5 sm:$0xff] }
 0x19a   : > { %v1632_v38 = vmax.f32 %v1432_v58, %v1538_v6  ;;  %v1341_v20 = vrot.slane %v1235_v9, 1  ;;  %v860_v62 = vadd.f32 %v859_v44, %v692_v17  ;;  %v5350_v17 = vld [vmem:[%s6097_s2] ss:$0 sm:$0xff]  ;;  %v1100_v41 = vpop.f32.mrf.mxu2  ;;  %v700_v16 = vpop.f32.mrf.mxu0 }
 0x19b   : > { %v1951_v22 = vmax.f32 %v1927_v15, %v1939_v4 }
 0x19c   : > { %v1734_v23 = vrot.slane %v1632_v38, 1  ;;  %v1342_v11 = vsel %vm898_vm2, %v1339_v49, %v1341_v20  ;;  %v1152_v57 = vadd.f32 %v5316_v1, %v860_v62 }
 0x19d   : > { %v1434_v28 = vmax.f32 %v1234_v30, %v1342_v11  ;;  %v1959_v63 = vpack.c.bf16 %v1951_v22, %v1951_v22 }
 0x19e   : > { %v1735_v50 = vsel %vm898_vm2, %v1732_v31, %v1734_v23  ;;  %v1196_v34 = vadd.f32 %v5350_v17, %v1152_v57 }
 0x19f   : > { %v1830_v58 = vmax.f32 %v1631_v2, %v1735_v50  ;;  %v1539_v36 = vrot.slane %v1434_v28, 2  ;;  %v1975_v19 = vunpack.c.l.b16 %v1959_v63 }
 0x1a0   : > { %v1236_v1 = vmax.f32 %v1196_v34, 0.0 }
 0x1a1   : > { %1871 = vst.msk [vmem:[#allocation2 + $0xb0] sm:$0xff] %vm1848_vm5, %v1830_v58  ;;  %v1540_v42 = vsel %vm1489_vm4, %v1537_v48, %v1539_v36  ;;  %v862_v24 = vpop.f32.mrf.mxu1  ;;  %v5355_v30 = vpack.c.b16 %v1975_v19, %v1974_v8 }
 0x1a2   : > { %v1633_v37 = vmax.f32 %v1433_v56, %v1540_v42  ;;  %v1343_v7 = vrot.slane %v1236_v1, 1  ;;  %v863_v49 = vadd.f32 %v862_v24, %v695_v47  ;;  %v1102_v62 = vpop.f32.mrf.mxu2  ;;  %v702_v35 = vpop.f32.mrf.mxu0 }
 0x1a3   : > { %v1992_v2 = vshll.u32 %v5355_v30, 16  ;;  %v1996_v29 = vshrl.u32 %v5355_v30, 16 }
 0x1a4   : > { %v1736_v18 = vrot.slane %v1633_v37, 1  ;;  %v1344_v55 = vsel %vm898_vm2, %v1341_v20, %v1343_v7  ;;  %v1153_v31 = vadd.f32 %v5326_v33, %v863_v49 }
 0x1a5   : > { %v1435_v26 = vmax.f32 %v1235_v9, %v1344_v55  ;;  %v1994_v45 = vrot.slane %v1992_v2, 1  ;;  %v2042_v0 = vrot.slane %v1996_v29, 1  ;;  %v2043_v14 = vrot.slane %v1992_v2, 2 }
 0x1a6   : > { %v1737_v56 = vsel %vm898_vm2, %v1734_v23, %v1736_v18  ;;  %v1197_v47 = vadd.f32 %v5350_v17, %v1153_v31 }
 0x1a7   : > { %v1831_v3 = vmax.f32 %v1632_v38, %v1737_v56  ;;  %v1541_v48 = vrot.slane %v1435_v26, 2  ;;  %v1995_v27 = vsel %vm376_vm1, %v1990_v51, %v1994_v45  ;;  %v5367_v13 = vor.u32 %v2043_v14, %v2042_v0 }
 0x1a8   : > { %v1237_v33 = vmax.f32 %v1197_v47, 0.0  ;;  %2020 = vrot.lane.b32.xlu0 %v1995_v27, %s4777_s14  ;;  %v5370_v9 = vor.u32 %v1996_v29, %v1994_v45 }
 0x1a9   : > { %1872 = vst.msk [vmem:[#allocation2 + $0xb8] sm:$0xff] %vm1848_vm5, %v1831_v3  ;;  %v1542_v10 = vsel %vm1489_vm4, %v1539_v36, %v1541_v48  ;;  %v864_v6 = vpop.f32.mrf.mxu1  ;;  %v2045_v44 = vsel %vm2038_vm6, %v2041_v32, %v5367_v13 }
 0x1aa   : > { %v1634_v15 = vmax.f32 %v1434_v28, %v1542_v10  ;;  %v1345_v38 = vrot.slane %v1237_v33, 1  ;;  %v865_v20 = vadd.f32 %v864_v6, %v697_v21  ;;  %2060 = vrot.lane.b32.xlu2 %v2045_v44, %s4777_s14  ;;  %v1105_v39 = vpop.f32.mrf.mxu2  ;;  %v705_v29 = vpop.f32.mrf.mxu0 }
 0x1ac   : > { %v1738_v4 = vrot.slane %v1634_v15, 1  ;;  %v1346_v22 = vsel %vm898_vm2, %v1343_v7, %v1345_v38  ;;  %v1154_v25 = vadd.f32 %v5336_v5, %v865_v20 }
 0x1ad   : > { %v1436_v23 = vmax.f32 %v1236_v1, %v1346_v22 }
 0x1ae   : > { %v1739_v11 = vsel %vm898_vm2, %v1736_v18, %v1738_v4  ;;  %v1198_v57 = vadd.f32 %v5350_v17, %v1154_v25 }
 0x1af   : > { %v1832_v54 = vmax.f32 %v1633_v37, %v1739_v11  ;;  %v1543_v63 = vrot.slane %v1436_v23, 2 }
 0x1b0   : > { %v1238_v50 = vmax.f32 %v1198_v57, 0.0 }
 0x1b1   : > { %1873 = vst.msk [vmem:[#allocation2 + $0xc0] sm:$0xff] %vm1848_vm5, %v1832_v54  ;;  %v1544_v21 = vsel %vm1489_vm4, %v1541_v48, %v1543_v63  ;;  %v867_v28 = vpop.f32.mrf.mxu1 }
 0x1b2   : > { %v1635_v34 = vmax.f32 %v1435_v26, %v1544_v21  ;;  %v1347_v58 = vrot.slane %v1238_v50, 1  ;;  %v868_v36 = vadd.f32 %v867_v28, %v700_v16  ;;  %v1107_v47 = vpop.f32.mrf.mxu2  ;;  %v707_v6 = vpop.f32.mrf.mxu0 }
 0x1b4   : > { %v1740_v8 = vrot.slane %v1635_v34, 1  ;;  %v1348_v5 = vsel %vm898_vm2, %v1345_v38, %v1347_v58  ;;  %v1155_v19 = vadd.f32 %v1100_v41, %v868_v36 }
 0x1b5   : > { %v1437_v1 = vmax.f32 %v1237_v33, %v1348_v5 }
 0x1b6   : > { %v1741_v42 = vsel %vm898_vm2, %v1738_v4, %v1740_v8  ;;  %v1199_v24 = vadd.f32 %v5350_v17, %v1155_v19 }
 0x1b7   : > { %v1833_v37 = vmax.f32 %v1634_v15, %v1741_v42  ;;  %v1545_v7 = vrot.slane %v1437_v1, 2 }
 0x1b8   : > { %v1239_v49 = vmax.f32 %v1199_v24, 0.0 }
 0x1b9   : > { %1874 = vst.msk [vmem:[#allocation2 + $0xc8] sm:$0xff] %vm1848_vm5, %v1833_v37  ;;  %v1546_v52 = vsel %vm1489_vm4, %v1543_v63, %v1545_v7  ;;  %v869_v2 = vpop.f32.mrf.mxu1 }
 0x1ba   : > { %v1636_v18 = vmax.f32 %v1436_v23, %v1546_v52  ;;  %v1349_v55 = vrot.slane %v1239_v49, 1  ;;  %v870_v31 = vadd.f32 %v869_v2, %v702_v35  ;;  %v1110_v54 = vpop.f32.mrf.mxu2  ;;  %v710_v36 = vpop.f32.mrf.mxu0 }
 0x1bc   : > { %v1742_v51 = vrot.slane %v1636_v18, 1  ;;  %v1350_v41 = vsel %vm898_vm2, %v1347_v58, %v1349_v55  ;;  %v1156_v26 = vadd.f32 %v1102_v62, %v870_v31 }
 0x1bd   : > { %v1438_v45 = vmax.f32 %v1238_v50, %v1350_v41 }
 0x1be   : > { %v1743_v0 = vsel %vm898_vm2, %v1740_v8, %v1742_v51  ;;  %v1200_v14 = vadd.f32 %v5350_v17, %v1156_v26 }
 0x1bf   : > { %v1834_v16 = vmax.f32 %v1635_v34, %v1743_v0  ;;  %v1547_v56 = vrot.slane %v1438_v45, 2 }
 0x1c0   : > { %v1240_v32 = vmax.f32 %v1200_v14, 0.0 }
 0x1c1   : > { %1875 = vst.msk [vmem:[#allocation2 + $0xd0] sm:$0xff] %vm1848_vm5, %v1834_v16  ;;  %v1548_v3 = vsel %vm1489_vm4, %v1545_v7, %v1547_v56  ;;  %v872_v48 = vpop.f32.mrf.mxu1 }
 0x1c2   : > { %v1637_v27 = vmax.f32 %v1437_v1, %v1548_v3  ;;  %v1351_v33 = vrot.slane %v1240_v32, 1  ;;  %v873_v10 = vadd.f32 %v872_v48, %v705_v29  ;;  %v1112_v52 = vpop.f32.mrf.mxu2 }
 0x1c4   : > { %v1744_v44 = vrot.slane %v1637_v27, 1  ;;  %v1352_v15 = vsel %vm898_vm2, %v1349_v55, %v1351_v33  ;;  %v1157_v38 = vadd.f32 %v1105_v39, %v873_v10 }
 0x1c5   : > { %v1439_v20 = vmax.f32 %v1239_v49, %v1352_v15 }
 0x1c6   : > { %v1745_v62 = vsel %vm898_vm2, %v1742_v51, %v1744_v44  ;;  %v1201_v4 = vadd.f32 %v5350_v17, %v1157_v38 }
 0x1c7   : > { %v1835_v22 = vmax.f32 %v1636_v18, %v1745_v62  ;;  %v1549_v25 = vrot.slane %v1439_v20, 2  ;;  %v1917_v62 = vld [vmem:[#allocation2 + $0xa5] ss:$5 sm:$0xff] }
 0x1c8   : > { %v1241_v23 = vmax.f32 %v1201_v4, 0.0 }
 0x1c9   : > { %1876 = vst.msk [vmem:[#allocation2 + $0xd8] sm:$0xff] %vm1848_vm5, %v1835_v22  ;;  %v1550_v11 = vsel %vm1489_vm4, %v1547_v56, %v1549_v25  ;;  %v874_v57 = vpop.f32.mrf.mxu1 }
 0x1ca   : > { %v1638_v63 = vmax.f32 %v1438_v45, %v1550_v11  ;;  %v1353_v35 = vrot.slane %v1241_v23, 1  ;;  %v875_v50 = vadd.f32 %v874_v57, %v707_v6  ;;  %v712_v45 = vpop.f32.mrf.mxu0  ;;  %v1115_v10 = vpop.f32.mrf.mxu2  ;;  %v1901_v57 = vld [vmem:[#allocation2 + $0xa0] ss:$5 sm:$0xff] }
 0x1cc   : > { %v1746_v21 = vrot.slane %v1638_v63, 1  ;;  %v1354_v28 = vsel %vm898_vm2, %v1351_v33, %v1353_v35  ;;  %v1158_v34 = vadd.f32 %v1107_v47, %v875_v50 }
 0x1cd   : > { %v1440_v58 = vmax.f32 %v1240_v32, %v1354_v28 }
 0x1ce   : > { %v1747_v8 = vsel %vm898_vm2, %v1744_v44, %v1746_v21  ;;  %v1202_v5 = vadd.f32 %v5350_v17, %v1158_v34 }
 0x1cf   : > { %v1836_v19 = vmax.f32 %v1637_v27, %v1747_v8  ;;  %v1551_v1 = vrot.slane %v1440_v58, 2 }
 0x1d0   : > { %v1242_v39 = vmax.f32 %v1202_v5, 0.0 }
 0x1d1   : > { %1877 = vst.msk [vmem:[#allocation2 + $0xe0] sm:$0xff] %vm1848_vm5, %v1836_v19  ;;  %v1552_v42 = vsel %vm1489_vm4, %v1549_v25, %v1551_v1  ;;  %v877_v24 = vpop.f32.mrf.mxu1 }
 0x1d2   : > { %v1639_v37 = vmax.f32 %v1439_v20, %v1552_v42  ;;  %v1355_v7 = vrot.slane %v1242_v39, 1  ;;  %v878_v49 = vadd.f32 %v877_v24, %v710_v36  ;;  %v1117_v5 = vpop.f32.mrf.mxu2 }
 0x1d4   : > { %v1748_v2 = vrot.slane %v1639_v37, 1  ;;  %v1356_v29 = vsel %vm898_vm2, %v1353_v35, %v1355_v7  ;;  %v1159_v18 = vadd.f32 %v1110_v54, %v878_v49  ;;  %v1928_v54 = vmax.f32 %v1901_v57, %v1917_v62 }
 0x1d5   : > { %v1441_v55 = vmax.f32 %v1241_v23, %v1356_v29 }
 0x1d6   : > { %v1749_v31 = vsel %vm898_vm2, %v1746_v21, %v1748_v2  ;;  %v1203_v51 = vadd.f32 %v5350_v17, %v1159_v18 }
 0x1d7   : > { %v1837_v41 = vmax.f32 %v1638_v63, %v1749_v31  ;;  %v1553_v26 = vrot.slane %v1441_v55, 2 }
 0x1d8   : > { %v1243_v0 = vmax.f32 %v1203_v51, 0.0 }
 0x1d9   : > { %1878 = vst.msk [vmem:[#allocation2 + $0xe8] sm:$0xff] %vm1848_vm5, %v1837_v41  ;;  %v1554_v14 = vsel %vm1489_vm4, %v1551_v1, %v1553_v26  ;;  %v879_v16 = vpop.f32.mrf.mxu1 }
 0x1da   : > { %v1640_v56 = vmax.f32 %v1440_v58, %v1554_v14  ;;  %v1357_v47 = vrot.slane %v1243_v0, 1  ;;  %v880_v32 = vadd.f32 %v879_v16, %v712_v45  ;;  %v1941_v58 = vld [vmem:[#allocation2 + $0xaa] ss:$5 sm:$0xff] }
 0x1db   : > { %v1952_v19 = vmax.f32 %v1928_v54, %v1941_v58 }
 0x1dc   : > { %v1750_v3 = vrot.slane %v1640_v56, 1  ;;  %v1358_v48 = vsel %vm898_vm2, %v1355_v7, %v1357_v47  ;;  %v1160_v27 = vadd.f32 %v1112_v52, %v880_v32 }
 0x1dd   : > { %v1442_v33 = vmax.f32 %v1242_v39, %v1358_v48  ;;  %v1960_v18 = vpack.c.bf16 %v1952_v19, %v1952_v19 }
 0x1de   : > { %v1751_v6 = vsel %vm898_vm2, %v1748_v2, %v1750_v3  ;;  %v1204_v44 = vadd.f32 %v5350_v17, %v1160_v27 }
 0x1df   : > { %v1838_v15 = vmax.f32 %v1639_v37, %v1751_v6  ;;  %v1555_v38 = vrot.slane %v1442_v33, 2 }
 0x1e0   : > { %v1244_v20 = vmax.f32 %v1204_v44, 0.0  ;;  %v1903_v39 = vld [vmem:[#allocation2 + $0xc8] ss:$5 sm:$0xff] }
 0x1e1   : > { %1879 = vst.msk [vmem:[#allocation2 + $0xf0] sm:$0xff] %vm1848_vm5, %v1838_v15  ;;  %v1556_v4 = vsel %vm1489_vm4, %v1553_v26, %v1555_v38  ;;  %v882_v22 = vpop.f32.mrf.mxu1 }
 0x1e2   : > { %v1641_v25 = vmax.f32 %v1441_v55, %v1556_v4  ;;  %v1359_v23 = vrot.slane %v1244_v20, 1  ;;  %v883_v11 = vadd.f32 %v882_v22, %v4968_v40 }
 0x1e4   : > { %v1752_v63 = vrot.slane %v1641_v25, 1  ;;  %v1360_v35 = vsel %vm898_vm2, %v1357_v47, %v1359_v23  ;;  %v1161_v50 = vadd.f32 %v1115_v10, %v883_v11 }
 0x1e5   : > { %v1443_v21 = vmax.f32 %v1243_v0, %v1360_v35 }
 0x1e6   : > { %v1753_v28 = vsel %vm898_vm2, %v1750_v3, %v1752_v63  ;;  %v1205_v34 = vadd.f32 %v5350_v17, %v1161_v50  ;;  %v1120_v3 = vpop.f32.mrf.mxu2 }
 0x1e7   : > { %v1839_v36 = vmax.f32 %v1640_v56, %v1753_v28  ;;  %v1557_v8 = vrot.slane %v1443_v21, 2  ;;  %v1976_v56 = vunpack.c.l.b16 %v1960_v18 }
 0x1e8   : > { %v1245_v1 = vmax.f32 %v1205_v34, 0.0  ;;  %v1919_v42 = vld [vmem:[#allocation2 + $0xcd] ss:$5 sm:$0xff] }
 0x1e9   : > { %1880 = vst.msk [vmem:[#allocation2 + $0xf8] sm:$0xff] %vm1848_vm5, %v1839_v36  ;;  %v1558_v40 = vsel %vm1489_vm4, %v1555_v38, %v1557_v8  ;;  %v884_v24 = vpop.f32.mrf.mxu1  ;;  %v1929_v37 = vmax.f32 %v1903_v39, %v1919_v42  ;;  %v1943_v2 = vld [vmem:[#allocation2 + $0xd2] ss:$5 sm:$0xff]  ;;  %v4778_v38 = vmov 0.0  }
 0x1ea   : > { %v1642_v7 = vmax.f32 %v1442_v33, %v1558_v40  ;;  %v1361_v49 = vrot.slane %v1245_v1, 1  ;;  %v885_v52 = vadd.f32 %v884_v24, %v4975_v46  ;;  %1890 = vst.msk [vmem:[#allocation2 + $0x13a] sm:$0xff] %vm1848_vm5, %v4778_v38 }
 0x1eb   : > { %v1953_v29 = vmax.f32 %v1929_v37, %v1943_v2  ;;  %1892 = vst.msk [vmem:[#allocation2 + $0x142] sm:$0x3f] %vm1891_vm7, %v4778_v38 }
 0x1ec   : > { %v1754_v55 = vrot.slane %v1642_v7, 1  ;;  %v1362_v31 = vsel %vm898_vm2, %v1359_v23, %v1361_v49  ;;  %v1162_v51 = vadd.f32 %v1117_v5, %v885_v52 }
 0x1ed   : > { %v1444_v41 = vmax.f32 %v1244_v20, %v1362_v31  ;;  %v1961_v26 = vpack.c.bf16 %v1953_v29, %v1953_v29 }
 0x1ee   : > { %v1755_v45 = vsel %vm898_vm2, %v1752_v63, %v1754_v55  ;;  %v1206_v0 = vadd.f32 %v5350_v17, %v1162_v51 }
 0x1ef   : > { %v1840_v14 = vmax.f32 %v1641_v25, %v1755_v45  ;;  %v1559_v16 = vrot.slane %v1444_v41, 2  ;;  %v1977_v47 = vunpack.c.l.b16 %v1961_v26 }
 0x1f0   : > { %v1246_v32 = vmax.f32 %v1206_v0, 0.0 }
 0x1f1   : > { %1881 = vst.msk [vmem:[#allocation2 + $0x100] sm:$0xff] %vm1848_vm5, %v1840_v14  ;;  %v1560_v46 = vsel %vm1489_vm4, %v1557_v8, %v1559_v16  ;;  %v887_v48 = vpop.f32.mrf.mxu1  ;;  %v5425_v27 = vpack.c.b16 %v1977_v47, %v1976_v56  ;;  %v1122_v8 = vpop.f32.mrf.mxu2 }
 0x1f2   : > { %v1643_v33 = vmax.f32 %v1443_v21, %v1560_v46  ;;  %v1363_v10 = vrot.slane %v1246_v32, 1  ;;  %v888_v6 = vadd.f32 %v887_v48, %v4983_v53 }
 0x1f3   : > { %v2000_v44 = vshll.u32 %v5425_v27, 16  ;;  %v2004_v15 = vshrl.u32 %v5425_v27, 16 }
 0x1f4   : > { %v1756_v20 = vrot.slane %v1643_v33, 1  ;;  %v1364_v62 = vsel %vm898_vm2, %v1361_v49, %v1363_v10  ;;  %v1163_v4 = vadd.f32 %v1120_v3, %v888_v6 }
 0x1f5   : > { %v1445_v22 = vmax.f32 %v1245_v1, %v1364_v62  ;;  %v5432_v25 = vrot.slane %v2000_v44, 1  ;;  %v2046_v11 = vrot.slane %v2004_v15, 1  ;;  %v2047_v35 = vrot.slane %v2000_v44, 2 }
 0x1f6   : > { %v1757_v23 = vsel %vm898_vm2, %v1754_v55, %v1756_v20  ;;  %v1207_v53 = vadd.f32 %v5350_v17, %v1163_v4 }
 0x1f7   : > { %v1841_v57 = vmax.f32 %v1642_v7, %v1757_v23  ;;  %v1561_v54 = vrot.slane %v1445_v22, 2  ;;  %v2003_v63 = vsel %vm376_vm1, %v5370_v9, %v5432_v25  ;;  %v5445_v5 = vor.u32 %v2047_v35, %v2046_v11 }
 0x1f8   : > { %v1247_v50 = vmax.f32 %v1207_v53, 0.0  ;;  %2022 = vrot.lane.b32.xlu0 %v2003_v63, %s4777_s14 }
 0x1f9   : > { %1882 = vst.msk [vmem:[#allocation2 + $0x108] sm:$0xff] %vm1848_vm5, %v1841_v57  ;;  %v1562_v21 = vsel %vm1489_vm4, %v1559_v16, %v1561_v54  ;;  %v889_v28 = vpop.f32.mrf.mxu1  ;;  %v2049_v7 = vsel %vm2038_vm6, %v5367_v13, %v5445_v5 }
 0x1fa   : > { %v1644_v34 = vmax.f32 %v1444_v41, %v1562_v21  ;;  %v1365_v58 = vrot.slane %v1247_v50, 1  ;;  %v890_v36 = vadd.f32 %v889_v28, %v4990_v60  ;;  %v2057_v60 = vrot.slane %v4776_v59, 2 }
 0x1fc   : > { %v1758_v19 = vrot.slane %v1644_v34, 1  ;;  %v1366_v1 = vsel %vm898_vm2, %v1363_v10, %v1365_v58  ;;  %v1164_v9 = vadd.f32 %v1122_v8, %v890_v36  ;;  %v5459_v31 = vor.u32 %v2057_v60, %v5310_v43  ;;  %v4596_v8 = vld [vmem:[%s6098_s3 + $0x178] sm:$0xff] }
 0x1fd   : > { %v1446_v39 = vmax.f32 %v1246_v32, %v1366_v1  ;;  %v4603_v1 = vld [vmem:[%s6098_s3 + $0x1b0] sm:$0xff]  ;;  %2701 = vmatpush.bf16.msrb.mxu0 %v4596_v8 }
 0x1fe   : > { %v1759_v42 = vsel %vm898_vm2, %v1756_v20, %v1758_v19  ;;  %v1208_v40 = vadd.f32 %v5350_v17, %v1164_v9  ;;  %v4611_v8 = vld [vmem:[%s6098_s3 + $0x1f0] sm:$0xff] }
 0x1ff   : > { %v1842_v24 = vmax.f32 %v1643_v33, %v1759_v42  ;;  %v1563_v37 = vrot.slane %v1446_v39, 2  ;;  %v4595_v42 = vld [vmem:[%s6098_s3 + $0x170] sm:$0xff] }
 0x200   : > { %v1248_v49 = vmax.f32 %v1208_v40, 0.0  ;;  %2062 = vrot.lane.b32.xlu0 %v2049_v7, %s4777_s14  ;;  %v2006_v40 = vor.u32 %v2004_v15, %v5432_v25  ;;  %v4594_v15 = vld [vmem:[%s6098_s3 + $0x168] sm:$0xff] }
 0x201   : > { %1883 = vst.msk [vmem:[#allocation2 + $0x110] sm:$0xff] %vm1848_vm5, %v1842_v24  ;;  %v1564_v52 = vsel %vm1489_vm4, %v1561_v54, %v1563_v37  ;;  %2702 = vmatpush.bf16.msrb.mxu0 %v4595_v42  ;;  %v4608_v42 = vld [vmem:[%s6098_s3 + $0x1d8] sm:$0xff] }
 0x202   : > { %v1645_v2 = vmax.f32 %v1445_v22, %v1564_v52  ;;  %v1367_v29 = vrot.slane %v1248_v49, 1 }
 0x204   : > { %v1760_v18 = vrot.slane %v1645_v2, 1  ;;  %v1368_v17 = vsel %vm898_vm2, %v1365_v58, %v1367_v29  ;;  %v1448_v55 = vmax.f32 %v1248_v49, %v1367_v29  ;;  %v4604_v58 = vld [vmem:[%s6098_s3 + $0x1b8] sm:$0xff]  ;;  %v4570_v49 = vld [vmem:[%s6098_s3 + $0xa8] sm:$0xff]  ;;  %v4569_v29 = vld [vmem:[%s6098_s3 + $0xa0] sm:$0xff] }
 0x205   : > { %v1447_v51 = vmax.f32 %v1247_v50, %v1368_v17  ;;  %2900 = vmatpush.bf16.msra.mxu1 %v4604_v58  ;;  %v4601_v17 = vld [vmem:[%s6098_s3 + $0x1a0] sm:$0xff]  ;;  %2703 = vmatpush.bf16.msrb.mxu0 %v4594_v15  ;;  %v4634_v15 = vld [vmem:[%s6098_s3 + $0x2a8] sm:$0xff] }
 0x206   : > { %v1761_v41 = vsel %vm898_vm2, %v1758_v19, %v1760_v18  ;;  %v1567_v26 = vrot.slane %v1448_v55, 2  ;;  %v4571_v19 = vld [vmem:[%s6098_s3 + $0xb0] sm:$0xff] }
 0x207   : > { %v1843_v45 = vmax.f32 %v1644_v34, %v1761_v41  ;;  %v1565_v0 = vrot.slane %v1447_v51, 2  ;;  %v4572_v34 = vld [vmem:[%s6098_s3 + $0xb8] sm:$0xff] }
 0x208   : > { %v1648_v59 = vmax.f32 %v1448_v55, %v1567_v26  ;;  %2131 = vrot.lane.b32.xlu0 %v5459_v31, %s4777_s14  ;;  %v1905_v62 = vld [vmem:[#allocation2 + $0xf0] ss:$5 sm:$0xff]  ;;  %2304 = vmatpush.bf16.msra.mxu3 %v4572_v34 }
 0x209   : > { %1884 = vst.msk [vmem:[#allocation2 + $0x118] sm:$0xff] %vm1848_vm5, %v1843_v45  ;;  %v1566_v14 = vsel %vm1489_vm4, %v1563_v37, %v1565_v0  ;;  %v1568_v16 = vsel %vm1489_vm4, %v1565_v0, %v1567_v26  ;;  %2901 = vmatpush.bf16.msra.mxu1 %v4603_v1  ;;  %v4593_v55 = vld [vmem:[%s6098_s3 + $0x160] sm:$0xff]  ;;  %v4600_v41 = vld [vmem:[%s6098_s3 + $0x198] sm:$0xff]  ;;  %v4567_v45 = vld [vmem:[%s6098_s3 + $0x90] sm:$0xff] }
 0x20a   : > { %v1646_v56 = vmax.f32 %v1446_v39, %v1566_v14  ;;  %v1647_v47 = vmax.f32 %v1447_v51, %v1568_v16  ;;  %v1766_v32 = vrot.slane %v1648_v59, 1  ;;  %2704 = vmatpush.bf16.msrb.mxu0 %v4593_v55  ;;  %v4592_v26 = vld [vmem:[%s6098_s3 + $0x158] sm:$0xff]  ;;  %v4599_v0 = vld [vmem:[%s6098_s3 + $0x190] sm:$0xff]  ;;  %v4566_v59 = vld [vmem:[%s6098_s3 + $0x88] sm:$0xff] }
 0x20b   : > { %v4598_v16 = vld [vmem:[%s6098_s3 + $0x188] sm:$0xff] }
 0x20c   : > { %v1762_v46 = vrot.slane %v1646_v56, 1  ;;  %v1764_v3 = vrot.slane %v1647_v47, 1  ;;  %2305 = vmatpush.bf16.msra.mxu3 %v4571_v19  ;;  %v4578_v19 = vld [vmem:[%s6098_s3 + $0xe8] sm:$0xff] }
 0x20d   : > { %v4610_v1 = vld [vmem:[%s6098_s3 + $0x1e8] sm:$0xff] }
 0x20e   : > { %v1763_v48 = vsel %vm898_vm2, %v1760_v18, %v1762_v46  ;;  %v1765_v33 = vsel %vm898_vm2, %v1762_v46, %v1764_v3  ;;  %v1767_v10 = vsel %vm898_vm2, %v1764_v3, %v1766_v32  ;;  %2705 = vmatpush.bf16.msrb.mxu0 %v4592_v26  ;;  %v4597_v32 = vld [vmem:[%s6098_s3 + $0x180] sm:$0xff]  ;;  %v5571_v3 = vpop.permute.xlu2 %2129 }
 0x20f   : > { %v1844_v6 = vmax.f32 %v1645_v2, %v1763_v48  ;;  %v1845_v44 = vmax.f32 %v1646_v56, %v1765_v33  ;;  %v1846_v38 = vmax.f32 %v1647_v47, %v1767_v10  ;;  %v4602_v2 = vld [vmem:[%s6098_s3 + $0x1a8] sm:$0xff]  ;;  %v2738_v56 = vsel %vm2038_vm6, %v5357_v61, %v5367_v13  ;;  %v4565_v47 = vld [vmem:[%s6098_s3 + $0x80] sm:$0xff]  ;;  %v4612_v48 = vld [vmem:[%s6098_s3 + $0x1f8] sm:$0xff] }
 0x210   : > { %2971 = vrot.lane.b32.xlu0 %v5459_v31, %s4777_s14  ;;  %v1921_v20 = vld [vmem:[#allocation2 + $0xf5] ss:$5 sm:$0xff]  ;;  %2306 = vmatpush.bf16.msra.mxu3 %v4570_v49 }
 0x211   : > { %1885 = vst.msk [vmem:[#allocation2 + $0x120] sm:$0xff] %vm1848_vm5, %v1844_v6  ;;  %v1930_v4 = vmax.f32 %v1905_v62, %v1921_v20  ;;  %v1945_v22 = vld [vmem:[#allocation2 + $0xfa] ss:$5 sm:$0xff]  ;;  %2902 = vmatpush.bf16.msra.mxu1 %v4602_v2  ;;  %2929 = vmatpush.bf16.msrb.mxu2 %v4612_v48 }
 0x212   : > { %1886 = vst.msk [vmem:[#allocation2 + $0x128] sm:$0xff] %vm1848_vm5, %v1845_v44  ;;  %v4590_v61 = vld [vmem:[%s6098_s3 + $0x148] sm:$0xff]  ;;  %v4589_v13 = vld [vmem:[%s6098_s3 + $0x140] sm:$0xff]  ;;  %v4580_v33 = vld [vmem:[%s6098_s3 + $0xf8] sm:$0xff] }
 0x213   : > { %1887 = vst.msk [vmem:[#allocation2 + $0x130] sm:$0xff] %vm1848_vm5, %v1846_v38  ;;  %v1954_v23 = vmax.f32 %v1930_v4, %v1945_v22  ;;  %v4579_v6 = vld [vmem:[%s6098_s3 + $0xf0] sm:$0xff]  ;;  %v2030_v38 = vrot.slane %v5355_v30, 1 }
 0x214   : > { %2307 = vmatpush.bf16.msra.mxu3 %v4569_v29  ;;  %v4575_v2 = vld [vmem:[%s6098_s3 + $0xd0] sm:$0xff] }
 0x215   : > { %v1962_v35 = vpack.c.bf16 %v1954_v23, %v1954_v23  ;;  %2903 = vmatpush.bf16.msra.mxu1 %v4601_v17  ;;  %2930 = vmatpush.bf16.msrb.mxu2 %v4611_v8 }
 0x217   : > { %v1978_v21 = vunpack.c.l.b16 %v1962_v35 }
 0x219   : > { %2904 = vmatpush.bf16.msra.mxu1 %v4600_v41  ;;  %2931 = vmatpush.bf16.msrb.mxu2 %v4610_v1 }
 0x21a   : > { %v1907_v53 = vld [vmem:[#allocation2 + $0x118] ss:$5 sm:$0xff]  ;;  %v2021_v46 = vpop.permute.xlu0 %2020 }
 0x21b   : > { %v1923_v11 = vld [vmem:[#allocation2 + $0x11d] ss:$5 sm:$0xff]  ;;  %v5581_v10 = vsel %vm1848_vm5, %v5338_v12, %v2021_v46 }
 0x21c   : > { %v1931_v57 = vmax.f32 %v1907_v53, %v1923_v11  ;;  %v1947_v54 = vld [vmem:[#allocation2 + $0x122] ss:$5 sm:$0xff]  ;;  %v2778_v62 = vrot.slane %v5581_v10, 6  ;;  %v2182_v22 = vrot.slane %v5581_v10, 2  ;;  %v2029_v53 = vrot.slane %v5338_v12, 1  ;;  %v2061_v11 = vpop.permute.xlu2 %2060 }
 0x21d   : > { %2905 = vmatpush.bf16.msra.mxu1 %v4599_v0  ;;  %v4574_v0 = vld [vmem:[%s6098_s3 + $0xc8] sm:$0xff]  ;;  %v4631_v46 = vld [vmem:[%s6098_s3 + $0x290] sm:$0xff] }
 0x21e   : > { %v1955_v63 = vmax.f32 %v1931_v57, %v1947_v54 }
 0x220   : > { %v1963_v50 = vpack.c.bf16 %v1955_v63, %v1955_v63  ;;  %v5600_v63 = vsel %vm898_vm2, %v2029_v53, %v2030_v38 }
 0x221   : > { %2906 = vmatpush.bf16.msra.mxu1 %v4598_v16  ;;  %v5604_v35 = vsel %vm1848_vm5, %v5600_v63, %v2061_v11  ;;  %v4628_v16 = vld [vmem:[%s6098_s3 + $0x278] sm:$0xff] }
 0x222   : > { %v1979_v28 = vunpack.c.l.b16 %v1963_v50 }
 0x224   : > { %v5481_v36 = vpack.c.b16 %v1979_v28, %v1978_v21  ;;  %v2553_v28 = vrot.slane %v5604_v35, 4 }
 0x225   : > { %2907 = vmatpush.bf16.msra.mxu1 %v4597_v32  ;;  %v4627_v32 = vld [vmem:[%s6098_s3 + $0x270] sm:$0xff] }
 0x226   : > { %v2008_v9 = vshll.u32 %v5481_v36, 16  ;;  %v2012_v39 = vshrl.u32 %v5481_v36, 16  ;;  %v2034_v48 = vrot.slane %v5481_v36, 1 }
 0x228   : > { %v2010_v24 = vrot.slane %v2008_v9, 1  ;;  %v2050_v37 = vrot.slane %v2012_v39, 1  ;;  %v2051_v7 = vrot.slane %v2008_v9, 2  ;;  %v4609_v9 = vld [vmem:[%s6098_s3 + $0x1e0] sm:$0xff] }
 0x229   : > { %2932 = vmatpush.bf16.msrb.mxu2 %v4609_v9  ;;  %v4622_v9 = vld [vmem:[%s6098_s3 + $0x248] sm:$0xff] }
 0x22a   : > { %v2011_v60 = vsel %vm376_vm1, %v2006_v40, %v2010_v24  ;;  %v2052_v52 = vor.u32 %v2051_v7, %v2050_v37  ;;  %v2014_v18 = vor.u32 %v2012_v39, %v2010_v24  ;;  %v4577_v39 = vld [vmem:[%s6098_s3 + $0xe0] sm:$0xff]  ;;  %v4607_v40 = vld [vmem:[%s6098_s3 + $0x1d0] sm:$0xff]  ;;  %v4576_v24 = vld [vmem:[%s6098_s3 + $0xd8] sm:$0xff] }
 0x22b   : > { %2024 = vrot.lane.b32.xlu1 %v2011_v60, %s4777_s14  ;;  %v4606_v37 = vld [vmem:[%s6098_s3 + $0x1c8] sm:$0xff]  ;;  %v4636_v7 = vld [vmem:[%s6098_s3 + $0x2b8] sm:$0xff]  ;;  %v4605_v60 = vld [vmem:[%s6098_s3 + $0x1c0] sm:$0xff] }
 0x22c   : > { %v2059_v25 = vsel %vm2038_vm6, %v2052_v52, %v5459_v31  ;;  %v4568_v31 = vld [vmem:[%s6098_s3 + $0x98] sm:$0xff]  ;;  %v2019_v51 = vsel %vm376_vm1, %v2014_v18, %v5310_v43  ;;  %v2053_v14 = vsel %vm2038_vm6, %v5445_v5, %v2052_v52  ;;  %v4591_v5 = vld [vmem:[%s6098_s3 + $0x150] sm:$0xff]  ;;  %3316 = vmatpush.bf16.msrb.mxu1 %v4636_v7  ;;  %v4633_v18 = vld [vmem:[%s6098_s3 + $0x2a0] sm:$0xff] }
 0x22d   : > { %2066 = vrot.lane.b32.xlu2 %v2059_v25, %s4777_s14  ;;  %2308 = vmatpush.bf16.msra.mxu3 %v4568_v31  ;;  %v4635_v52 = vld [vmem:[%s6098_s3 + $0x2b0] sm:$0xff] }
 0x22e   : > { %2706 = vmatpush.bf16.msrb.mxu0 %v4591_v5  ;;  %2933 = vmatpush.bf16.msrb.mxu2 %v4608_v42  ;;  %v2037_v42 = vsel %vm898_vm2, %v2034_v48, %v5310_v43 }
 0x230   : > { %3317 = vmatpush.bf16.msrb.mxu1 %v4635_v52 }
 0x231   : > { %2309 = vmatpush.bf16.msra.mxu3 %v4567_v45 }
 0x232   : > { %2707 = vmatpush.bf16.msrb.mxu0 %v4590_v61  ;;  %2934 = vmatpush.bf16.msrb.mxu2 %v4607_v40  ;;  %v4643_v40 = vld [vmem:[%s6098_s3 + $0x2f0] sm:$0xff] }
 0x233   : > { %2026 = vrot.lane.b32.xlu1 %v2019_v51, %s4777_s14  ;;  %v5674_v51 = vsel %vm1848_vm5, 0, %v5571_v3 }
 0x234   : > { %3318 = vmatpush.bf16.msrb.mxu1 %v4634_v15  ;;  %v2792_v7 = vrot.slane %v5674_v51, 6  ;;  %v4554_v15 = vld [vmem:[%s6098_s3 + $0x28] sm:$0xff] }
 0x235   : > { %2967 = vrot.lane.b32.xlu2 %v5310_v43, %s4777_s14  ;;  %2310 = vmatpush.bf16.msra.mxu3 %v4566_v59  ;;  %v2564_v59 = vrot.slane %v5674_v51, 4 }
 0x236   : > { %2708 = vmatpush.bf16.msrb.mxu0 %v4589_v13  ;;  %2935 = vmatpush.bf16.msrb.mxu2 %v4606_v37  ;;  %v4621_v37 = vld [vmem:[%s6098_s3 + $0x240] sm:$0xff] }
 0x238   : > { %3319 = vmatpush.bf16.msrb.mxu1 %v4633_v18  ;;  %v4553_v18 = vld [vmem:[%s6098_s3 + $0x20] sm:$0xff] }
 0x239   : > { %2311 = vmatpush.bf16.msra.mxu3 %v4565_v47  ;;  %v4573_v47 = vld [vmem:[%s6098_s3 + $0xc0] sm:$0xff] }
 0x23a   : > { %2936 = vmatpush.bf16.msrb.mxu2 %v4605_v60  ;;  %3138 = vmatpush.bf16.msra.mxu0 %v4628_v16  ;;  %v4640_v16 = vld [vmem:[%s6098_s3 + $0x2d8] sm:$0xff] }
 0x23b   : > { %2064 = vrot.lane.b32.xlu1 %v2053_v14, %s4777_s14 }
 0x23d   : > { %2333 = vmatpush.bf16.msrb.mxu3 %v4580_v33  ;;  %v4626_v33 = vld [vmem:[%s6098_s3 + $0x268] sm:$0xff] }
 0x23e   : > { %3139 = vmatpush.bf16.msra.mxu0 %v4627_v32  ;;  %v2185_v32 = vrot.slane %v5604_v35, 2 }
 0x241   : > { %2334 = vmatpush.bf16.msrb.mxu3 %v4579_v6  ;;  %v4630_v6 = vld [vmem:[%s6098_s3 + $0x288] sm:$0xff] }
 0x242   : > { %3140 = vmatpush.bf16.msra.mxu0 %v4626_v33  ;;  %v4552_v33 = vld [vmem:[%s6098_s3 + $0x18] sm:$0xff] }
 0x243   : > { %2739 = vrot.lane.b32.xlu1 %v2738_v56, %s4777_s14  ;;  %v4632_v56 = vld [vmem:[%s6098_s3 + $0x298] sm:$0xff]  ;;  %s4732_s14 = scalar_lea.hbm %s6100_s5, 2 }
 0x244   : > { %3320 = vmatpush.bf16.msrb.mxu1 %v4632_v56  ;;  %p4734_p1 = scmp.lt.s32.totalorder %s4732_s14, %s4728_s16 }
 0x245   : > { %2335 = vmatpush.bf16.msrb.mxu3 %v4578_v19 }
 0x246   : > { %p4735_p2 = por %p4734_p1, %p4733_p0 }
 0x248   : > { %3321 = vmatpush.bf16.msrb.mxu1 %v4631_v46  ;;  %p4736_p3 = pnand %p4735_p2, %p4731_p13 }
 0x249   : > { %2336 = vmatpush.bf16.msrb.mxu3 %v4577_v39  ;;  %v4644_v39 = vld [vmem:[%s6098_s3 + $0x2f8] sm:$0xff] }
 0x24a   : > { %3345 = vmatpush.bf16.msra.mxu2 %v4644_v39  ;;  %v4656_v39 = vld [vmem:[%s6098_s3 + $0x358] sm:$0xff] }
 0x24c   : > { %3322 = vmatpush.bf16.msrb.mxu1 %v4630_v6  ;;  %v4638_v6 = vld [vmem:[%s6098_s3 + $0x2c8] sm:$0xff] }
 0x24d   : > { %2337 = vmatpush.bf16.msrb.mxu3 %v4576_v24  ;;  %v2196_v24 = vrot.slane %v5674_v51, 2  ;;  %v4648_v51 = vld [vmem:[%s6098_s3 + $0x318] sm:$0xff] }
 0x24e   : > { %3346 = vmatpush.bf16.msra.mxu2 %v4643_v40 }
 0x251   : > { %2338 = vmatpush.bf16.msrb.mxu3 %v4575_v2 }
 0x255   : > { %2339 = vmatpush.bf16.msrb.mxu3 %v4574_v0 }
 0x259   : > { %2340 = vmatpush.bf16.msrb.mxu3 %v4573_v47 }
 0x26a   : > { %v2023_v44 = vpop.permute.xlu0 %2022 }
 0x26b   : > { %v5589_v20 = vsel %vm1848_vm5, %v5355_v30, %v2023_v44  ;;  %v2032_v30 = vrot.slane %v5425_v27, 1 }
 0x26c   : > { %v2779_v4 = vrot.slane %v5589_v20, 6  ;;  %v2183_v23 = vrot.slane %v5589_v20, 2 }
 0x26d   : > { %v2033_v12 = vsel %vm898_vm2, %v2030_v38, %v2032_v30  ;;  %v2035_v38 = vsel %vm898_vm2, %v2032_v30, %v2034_v48  ;;  %v4556_v30 = vld [vmem:[%s6098_s3 + $0x38] sm:$0xff] }
 0x26e   : > { %v2184_v57 = vsel %vm1489_vm4, %v2182_v22, %v2183_v23  ;;  %v2780_v54 = vsel %vm2777_vm8, %v2778_v62, %v2779_v4 }
 0x26f   : > { %2312 = vmatmul.bf16.vlgmr.msra.gmra.mxu3 %v2184_v57  ;;  %2908 = vmatmul.bf16.vlgmr.msra.gmra.mxu1 %v2780_v54 }
 0x270   : > { %2458 = vmatpush.bf16.msra.mxu3 %v4556_v30  ;;  %v4549_v30 = vld [vmem:[%s6098_s3] sm:$0xff] }
 0x272   : > { %v2063_v50 = vpop.permute.xlu0 %2062 }
 0x273   : > { %v5610_v21 = vsel %vm1848_vm5, %v2033_v12, %v2063_v50  ;;  %v4624_v12 = vld [vmem:[%s6098_s3 + $0x258] sm:$0xff]  ;;  %v4555_v50 = vld [vmem:[%s6098_s3 + $0x30] sm:$0xff] }
 0x274   : > { %v2554_v34 = vrot.slane %v5610_v21, 4  ;;  %v2782_v19 = vrot.slane %v5610_v21, 6  ;;  %2459 = vmatpush.bf16.msra.mxu3 %v4555_v50  ;;  %v2186_v47 = vrot.slane %v5610_v21, 2  ;;  %v4659_v50 = vld [vmem:[%s6098_s3 + $0x370] sm:$0xff] }
 0x276   : > { %v2555_v58 = vsel %vm612_vm0, %v2553_v28, %v2554_v34  ;;  %v2187_v46 = vsel %vm1489_vm4, %v2185_v32, %v2186_v47 }
 0x277   : > { %2709 = vmatmul.bf16.vlgmr.msrb.gmra.mxu0 %v2555_v58 }
 0x278   : > { %2460 = vmatpush.bf16.msra.mxu3 %v4554_v15  ;;  %v4561_v15 = vld [vmem:[%s6098_s3 + $0x60] sm:$0xff] }
 0x27c   : > { %2461 = vmatpush.bf16.msra.mxu3 %v4553_v18 }
 0x280   : > { %2462 = vmatpush.bf16.msra.mxu3 %v4552_v33  ;;  %v4587_v33 = vld [vmem:[%s6098_s3 + $0x130] sm:$0xff] }
 0x287   : > { %v5647_v49 = vpop.permute.xlu2 %2066 }
 0x28f   : > { %v5661_v29 = vpop.permute.xlu2 %2967 }
 0x290   : > { %v5678_v41 = vsel %vm1848_vm5, 0, %v5661_v29 }
 0x291   : > { %v3415_v14 = vrot.slane %v5678_v41, 4 }
 0x293   : > { %v5705_v61 = vsel %vm612_vm0, %v3415_v14, %v2564_v59 }
 0x29d   : > { %v2025_v25 = vpop.permute.xlu1 %2024 }
 0x29e   : > { %v5668_v17 = vsel %vm1848_vm5, %v5425_v27, %v2025_v25  ;;  %v4629_v27 = vld [vmem:[%s6098_s3 + $0x280] sm:$0xff]  ;;  %v4642_v25 = vld [vmem:[%s6098_s3 + $0x2e8] sm:$0xff] }
 0x29f   : > { %v2188_v55 = vrot.slane %v5668_v17, 2  ;;  %v2784_v31 = vrot.slane %v5668_v17, 6  ;;  %3323 = vmatpush.bf16.msrb.mxu1 %v4629_v27  ;;  %3347 = vmatpush.bf16.msra.mxu2 %v4642_v25  ;;  %v4550_v27 = vld [vmem:[%s6098_s3 + $0x8] sm:$0xff] }
 0x2a1   : > { %v5681_v26 = vsel %vm1489_vm4, %v2183_v23, %v2188_v55  ;;  %v2785_v45 = vsel %vm2777_vm8, %v2779_v4, %v2784_v31  ;;  %v4625_v4 = vld [vmem:[%s6098_s3 + $0x260] sm:$0xff] }
 0x2a2   : > { %2317 = vmatmul.bf16.gmra.mxu3 %v5681_v26  ;;  %2913 = vmatmul.bf16.gmra.mxu1 %v2785_v45  ;;  %v2132_v45 = vpop.permute.xlu0 %2131 }
 0x2a3   : > { %3141 = vmatpush.bf16.msra.mxu0 %v4625_v4 }
 0x2a5   : > { %v2027_v5 = vpop.permute.xlu1 %2026 }
 0x2a6   : > { %v5709_v13 = vsel %vm1848_vm5, %v5481_v36, %v2027_v5  ;;  %v4639_v5 = vld [vmem:[%s6098_s3 + $0x2d0] sm:$0xff] }
 0x2a7   : > { %v5715_v3 = vrot.slane %v5709_v13, 4  ;;  %v5732_v36 = vrot.slane %v5709_v13, 2  ;;  %v2788_v23 = vrot.slane %v5709_v13, 6  ;;  %3142 = vmatpush.bf16.msra.mxu0 %v4624_v12 }
 0x2a9   : > { %v5726_v44 = vsel %vm612_vm0, %v5715_v3, %v3415_v14  ;;  %v5747_v11 = vsel %vm1489_vm4, %v2188_v55, %v5732_v36  ;;  %v2789_v54 = vsel %vm2777_vm8, %v2784_v31, %v2788_v23  ;;  %v2793_v2 = vsel %vm2777_vm8, %v2788_v23, %v2792_v7  ;;  %v4641_v31 = vld [vmem:[%s6098_s3 + $0x2e0] sm:$0xff] }
 0x2aa   : > { %3348 = vmatpush.bf16.msra.mxu2 %v4641_v31  ;;  %v5822_v14 = vsel %vm1848_vm5, %v5310_v43, %v2132_v45  ;;  %v2972_v25 = vpop.permute.xlu0 %2971  ;;  %v4559_v45 = vld [vmem:[%s6098_s3 + $0x50] sm:$0xff] }
 0x2ab   : > { %v2566_v56 = vrot.slane %v5822_v14, 4  ;;  %v2794_v12 = vrot.slane %v5822_v14, 6  ;;  %v2198_v40 = vrot.slane %v5822_v14, 2  ;;  %v2978_v18 = vsel %vm1848_vm5, %v5310_v43, %v2972_v25  ;;  %v4614_v25 = vld [vmem:[%s6098_s3 + $0x208] sm:$0xff] }
 0x2ac   : > { %v3212_v31 = vrot.slane %v2978_v18, 2 }
 0x2ad   : > { %v2065_v62 = vpop.permute.xlu1 %2064 }
 0x2ae   : > { %v5738_v22 = vsel %vm1848_vm5, %v2035_v38, %v2065_v62  ;;  %3349 = vmatpush.bf16.msra.mxu2 %v4640_v16  ;;  %v4637_v38 = vld [vmem:[%s6098_s3 + $0x2c0] sm:$0xff]  ;;  %v4551_v62 = vld [vmem:[%s6098_s3 + $0x10] sm:$0xff]  ;;  %v4558_v16 = vld [vmem:[%s6098_s3 + $0x48] sm:$0xff]  ;;  %v3215_v32 = vsel %vm1489_vm4, %v3212_v31, %v2198_v40 }
 0x2af   : > { %v2558_v53 = vrot.slane %v5738_v22, 4  ;;  %v2786_v55 = vrot.slane %v5738_v22, 6  ;;  %2463 = vmatpush.bf16.msra.mxu3 %v4551_v62 }
 0x2b1   : > { %v5752_v57 = vsel %vm612_vm0, %v2554_v34, %v2558_v53  ;;  %v4623_v34 = vld [vmem:[%s6098_s3 + $0x250] sm:$0xff]  ;;  %v2787_v0 = vsel %vm2777_vm8, %v2782_v19, %v2786_v55 }
 0x2b2   : > { %2322 = vmatmul.bf16.gmra.mxu3 %v5747_v11  ;;  %2714 = vmatmul.bf16.gmra.mxu0 %v5752_v57 }
 0x2b3   : > { %2918 = vmatmul.bf16.gmra.mxu1 %v2789_v54  ;;  %3143 = vmatpush.bf16.msra.mxu0 %v4623_v34  ;;  %v4660_v54 = vld [vmem:[%s6098_s3 + $0x378] sm:$0xff]  ;;  %v4657_v34 = vld [vmem:[%s6098_s3 + $0x360] sm:$0xff] }
 0x2b4   : > { %3350 = vmatpush.bf16.msra.mxu2 %v4639_v5  ;;  %2464 = vmatpush.bf16.msra.mxu3 %v4550_v27  ;;  %v4557_v5 = vld [vmem:[%s6098_s3 + $0x40] sm:$0xff] }
 0x2b5   : > { %v2740_v28 = vpop.permute.xlu1 %2739 }
 0x2b6   : > { %v2742_v58 = vsel %vm1848_vm5, %v5600_v63, %v2740_v28  ;;  %v5783_v63 = vsel %vm1848_vm5, %v2037_v42, %v5647_v49  ;;  %v2197_v49 = vsel %vm1489_vm4, %v5732_v36, %v2196_v24  ;;  %v4655_v42 = vld [vmem:[%s6098_s3 + $0x350] sm:$0xff] }
 0x2b7   : > { %v2781_v8 = vrot.slane %v2742_v58, 6  ;;  %3144 = vmatpush.bf16.msra.mxu0 %v4622_v9  ;;  %v5794_v60 = vrot.slane %v5783_v63, 4  ;;  %v2790_v4 = vrot.slane %v5783_v63, 6  ;;  %v3210_v58 = vrot.slane %v5678_v41, 2  ;;  %v4564_v9 = vld [vmem:[%s6098_s3 + $0x78] sm:$0xff]  ;;  %v4563_v41 = vld [vmem:[%s6098_s3 + $0x70] sm:$0xff] }
 0x2b8   : > { %3351 = vmatpush.bf16.msra.mxu2 %v4638_v6  ;;  %2465 = vmatpush.bf16.msra.mxu3 %v4549_v30  ;;  %v3417_v6 = vrot.slane %v2978_v18, 4 }
 0x2b9   : > { %v2783_v1 = vsel %vm2777_vm8, %v2781_v8, %v2782_v19  ;;  %v5802_v52 = vsel %vm612_vm0, %v2558_v53, %v5794_v60  ;;  %v2567_v48 = vsel %vm612_vm0, %v5794_v60, %v2566_v56  ;;  %v2791_v23 = vsel %vm2777_vm8, %v2786_v55, %v2790_v4 }
 0x2ba   : > { %2937 = vmatmul.bf16.vlgmr.msrb.gmra.mxu2 %v2783_v1  ;;  %v2795_v28 = vsel %vm2777_vm8, %v2790_v4, %v2794_v12  ;;  %v2194_v8 = vrot.slane %v5783_v63, 2  ;;  %v3211_v1 = vsel %vm1489_vm4, %v5732_v36, %v3210_v58  ;;  %v4654_v36 = vld [vmem:[%s6098_s3 + $0x348] sm:$0xff]  ;;  %v3418_v62 = vsel %vm612_vm0, %v5794_v60, %v3417_v6  ;;  %v4584_v60 = vld [vmem:[%s6098_s3 + $0x118] sm:$0xff] }
 0x2bb   : > { %3145 = vmatpush.bf16.msra.mxu0 %v4621_v37  ;;  %v4653_v37 = vld [vmem:[%s6098_s3 + $0x340] sm:$0xff] }
 0x2bc   : > { %3352 = vmatpush.bf16.msra.mxu2 %v4637_v38  ;;  %v2199_v7 = vsel %vm1489_vm4, %v2194_v8, %v2198_v40 }
 0x2bf   : > { %3550 = vmatpush.bf16.msrb.mxu0 %v4660_v54  ;;  %v4583_v54 = vld [vmem:[%s6098_s3 + $0x110] sm:$0xff] }
 0x2c2   : > { %2327 = vmatmul.bf16.gmra.mxu3 %v2197_v49  ;;  %2719 = vmatmul.bf16.gmra.mxu0 %v5802_v52  ;;  %v3214_v49 = vsel %vm1489_vm4, %v3210_v58, %v2196_v24  ;;  %v4560_v24 = vld [vmem:[%s6098_s3 + $0x58] sm:$0xff]  ;;  %v4619_v58 = vld [vmem:[%s6098_s3 + $0x230] sm:$0xff] }
 0x2c3   : > { %2923 = vmatmul.bf16.gmra.mxu1 %v2793_v2  ;;  %3551 = vmatpush.bf16.msrb.mxu0 %v4659_v50  ;;  %v4562_v2 = vld [vmem:[%s6098_s3 + $0x68] sm:$0xff]  ;;  %v4581_v50 = vld [vmem:[%s6098_s3 + $0x100] sm:$0xff] }
 0x2ca   : > { %2942 = vmatmul.bf16.gmra.mxu2 %v2787_v0  ;;  %v3213_v0 = vsel %vm1489_vm4, %v2194_v8, %v3212_v31 }
 0x2d2   : > { %2341 = vmatmul.bf16.vlgmr.msrb.gmra.mxu3 %v2187_v46  ;;  %2724 = vmatmul.bf16.gmra.mxu0 %v2567_v48 }
 0x2d3   : > { %3324 = vmatmul.bf16.vlgmr.msrb.gmra.mxu1 %v5681_v26  ;;  %v2190_v26 = vrot.slane %v5738_v22, 2  ;;  %2487 = vmatpush.bf16.msrb.mxu3 %v4564_v9  ;;  %v2551_v9 = vrot.slane %v5589_v20, 4 }
 0x2d5   : > { %v2191_v53 = vsel %vm1489_vm4, %v2186_v47, %v2190_v26  ;;  %v2195_v19 = vsel %vm1489_vm4, %v2190_v26, %v2194_v8 }
 0x2d7   : > { %2488 = vmatpush.bf16.msrb.mxu3 %v4563_v41  ;;  %v2550_v41 = vrot.slane %v5581_v10, 4 }
 0x2da   : > { %2947 = vmatmul.bf16.gmra.mxu2 %v2791_v23  ;;  %v4585_v23 = vld [vmem:[%s6098_s3 + $0x120] sm:$0xff] }
 0x2db   : > { %2489 = vmatpush.bf16.msrb.mxu3 %v4562_v2 }
 0x2df   : > { %2490 = vmatpush.bf16.msrb.mxu3 %v4561_v15 }
 0x2e2   : > { %2346 = vmatmul.bf16.gmra.mxu3 %v2191_v53  ;;  %3146 = vmatmul.bf16.vlgmr.msra.gmra.mxu0 %v5610_v21 }
 0x2e3   : > { %3329 = vmatmul.bf16.gmra.mxu1 %v5747_v11  ;;  %v4658_v11 = vld [vmem:[%s6098_s3 + $0x368] sm:$0xff]  ;;  %2491 = vmatpush.bf16.msrb.mxu3 %v4560_v24 }
 0x2e4   : > { %3552 = vmatpush.bf16.msrb.mxu0 %v4658_v11 }
 0x2e7   : > { %2492 = vmatpush.bf16.msrb.mxu3 %v4559_v45 }
 0x2e8   : > { %3553 = vmatpush.bf16.msrb.mxu0 %v4657_v34 }
 0x2ea   : > { %2952 = vmatmul.bf16.gmra.mxu2 %v2795_v28 }
 0x2eb   : > { %2493 = vmatpush.bf16.msrb.mxu3 %v4558_v16 }
 0x2ec   : > { %3554 = vmatpush.bf16.msrb.mxu0 %v4656_v39 }
 0x2ef   : > { %2494 = vmatpush.bf16.msrb.mxu3 %v4557_v5 }
 0x2f0   : > { %3555 = vmatpush.bf16.msrb.mxu0 %v4655_v42  ;;  %v2552_v42 = vsel %vm612_vm0, %v2550_v41, %v2551_v9 }
 0x2f2   : > { %2351 = vmatmul.bf16.gmra.mxu3 %v2195_v19  ;;  %3151 = vmatmul.bf16.gmra.mxu0 %v5738_v22  ;;  %v5919_v55 = vpop.f32.mrf.mxu3 }
 0x2f3   : > { %3334 = vmatmul.bf16.gmra.mxu1 %v3211_v1  ;;  %v4617_v1 = vld [vmem:[%s6098_s3 + $0x220] sm:$0xff] }
 0x2f4   : > { %3556 = vmatpush.bf16.msrb.mxu0 %v4654_v36 }
 0x2f8   : > { %3557 = vmatpush.bf16.msrb.mxu0 %v4653_v37 }
 0x2fa   : > { %3353 = vmatmul.bf16.vlgmr.msra.gmra.mxu2 %v2191_v53  ;;  %v2315_v43 = vpop.f32.mrf.mxu3  ;;  %v3420_v53 = vsel %vm612_vm0, %v3417_v6, %v2566_v56  ;;  %v4647_v6 = vld [vmem:[%s6098_s3 + $0x310] sm:$0xff] }
 0x302   : > { %2356 = vmatmul.bf16.gmra.mxu3 %v2199_v7  ;;  %3156 = vmatmul.bf16.gmra.mxu0 %v5783_v63  ;;  %v4615_v7 = vld [vmem:[%s6098_s3 + $0x210] sm:$0xff] }
 0x303   : > { %3339 = vmatmul.bf16.gmra.mxu1 %v3214_v49 }
 0x30a   : > { %3358 = vmatmul.bf16.gmra.mxu2 %v2195_v19  ;;  %v4618_v19 = vld [vmem:[%s6098_s3 + $0x228] sm:$0xff] }
 0x312   : > { %2466 = vmatmul.bf16.vlgmr.msra.gmra.mxu3 %v5581_v10  ;;  %3161 = vmatmul.bf16.gmra.mxu0 %v2978_v18  ;;  %v2556_v10 = vrot.slane %v5668_v17, 4 }
 0x314   : > { %v2557_v15 = vsel %vm612_vm0, %v2551_v9, %v2556_v10 }
 0x31a   : > { %3363 = vmatmul.bf16.gmra.mxu2 %v3213_v0  ;;  %v2561_v0 = vsel %vm612_vm0, %v2556_v10, %v5715_v3 }
 0x322   : > { %2471 = vmatmul.bf16.gmra.mxu3 %v5589_v20  ;;  %3558 = vmatmul.bf16.vlgmr.msrb.gmra.mxu0 %v5752_v57  ;;  %v4588_v57 = vld [vmem:[%s6098_s3 + $0x138] sm:$0xff] }
 0x323   : > { %2672 = vmatpush.bf16.msra.mxu3 %v4588_v57 }
 0x325   : > { %v2318_v47 = vpop.f32.mrf.mxu3 }
 0x327   : > { %2673 = vmatpush.bf16.msra.mxu3 %v4587_v33 }
 0x32a   : > { %3368 = vmatmul.bf16.gmra.mxu2 %v3215_v32  ;;  %v2565_v32 = vsel %vm612_vm0, %v5715_v3, %v2564_v59 }
 0x32d   : > { %v2320_v46 = vpop.f32.mrf.mxu3 }
 0x332   : > { %2476 = vmatmul.bf16.gmra.mxu3 %v5668_v17  ;;  %3563 = vmatmul.bf16.gmra.mxu0 %v5802_v52  ;;  %v4586_v52 = vld [vmem:[%s6098_s3 + $0x128] sm:$0xff] }
 0x333   : > { %2674 = vmatpush.bf16.msra.mxu3 %v4586_v52 }
 0x335   : > { %v2323_v48 = vpop.f32.mrf.mxu3 }
 0x336   : > { %v4649_v48 = vld [vmem:[%s6098_s3 + $0x320] sm:$0xff] }
 0x337   : > { %2675 = vmatpush.bf16.msra.mxu3 %v4585_v23  ;;  %v4645_v23 = vld [vmem:[%s6098_s3 + $0x300] sm:$0xff] }
 0x33b   : > { %2676 = vmatpush.bf16.msra.mxu3 %v4584_v60 }
 0x33d   : > { %v2325_v38 = vpop.f32.mrf.mxu3 }
 0x33f   : > { %2677 = vmatpush.bf16.msra.mxu3 %v4583_v54 }
 0x342   : > { %2481 = vmatmul.bf16.gmra.mxu3 %v5709_v13  ;;  %3568 = vmatmul.bf16.gmra.mxu0 %v3418_v62 }
 0x345   : > { %v2328_v4 = vpop.f32.mrf.mxu3 }
 0x34d   : > { %v2330_v26 = vpop.f32.mrf.mxu3 }
 0x34e   : > { %v2710_v26 = vpop.f32.mrf.mxu0 }
 0x352   : > { %2495 = vmatmul.bf16.vlgmr.msrb.gmra.mxu3 %v5604_v35  ;;  %3573 = vmatmul.bf16.gmra.mxu0 %v3420_v53  ;;  %v4582_v35 = vld [vmem:[%s6098_s3 + $0x108] sm:$0xff] }
 0x353   : > { %2678 = vmatpush.bf16.msra.mxu3 %v4582_v35 }
 0x355   : > { %v2342_v27 = vpop.f32.mrf.mxu3 }
 0x356   : > { %v2343_v36 = vadd.f32 %v2342_v27, %v5919_v55  ;;  %v4613_v55 = vld [vmem:[%s6098_s3 + $0x200] sm:$0xff]  ;;  %v2712_v27 = vpop.f32.mrf.mxu0 }
 0x357   : > { %2679 = vmatpush.bf16.msra.mxu3 %v4581_v50 }
 0x35d   : > { %v2344_v30 = vpop.f32.mrf.mxu3 }
 0x35e   : > { %v2345_v12 = vadd.f32 %v2344_v30, %v2315_v43  ;;  %v4652_v43 = vld [vmem:[%s6098_s3 + $0x338] sm:$0xff] }
 0x362   : > { %2500 = vmatmul.bf16.gmra.mxu3 %v5610_v21  ;;  %v4620_v21 = vld [vmem:[%s6098_s3 + $0x238] sm:$0xff] }
 0x363   : > { %3109 = vmatpush.bf16.msrb.mxu3 %v4620_v21 }
 0x365   : > { %v2347_v14 = vpop.f32.mrf.mxu3 }
 0x366   : > { %v2348_v56 = vadd.f32 %v2347_v14, %v2318_v47  ;;  %v4651_v47 = vld [vmem:[%s6098_s3 + $0x330] sm:$0xff] }
 0x367   : > { %3110 = vmatpush.bf16.msrb.mxu3 %v4619_v58 }
 0x36b   : > { %3111 = vmatpush.bf16.msrb.mxu3 %v4618_v19 }
 0x36d   : > { %v2349_v28 = vpop.f32.mrf.mxu3 }
 0x36e   : > { %v2350_v11 = vadd.f32 %v2349_v28, %v2320_v46  ;;  %v4650_v46 = vld [vmem:[%s6098_s3 + $0x328] sm:$0xff] }
 0x36f   : > { %3112 = vmatpush.bf16.msrb.mxu3 %v4617_v1 }
 0x372   : > { %2505 = vmatmul.bf16.gmra.mxu3 %v5738_v22 }
 0x375   : > { %v2352_v34 = vpop.f32.mrf.mxu3 }
 0x37d   : > { %v2354_v8 = vpop.f32.mrf.mxu3 }
 0x382   : > { %2510 = vmatmul.bf16.gmra.mxu3 %v5783_v63  ;;  %v4616_v63 = vld [vmem:[%s6098_s3 + $0x218] sm:$0xff] }
 0x383   : > { %3113 = vmatpush.bf16.msrb.mxu3 %v4616_v63 }
 0x385   : > { %v2357_v22 = vpop.f32.mrf.mxu3 }
 0x387   : > { %3114 = vmatpush.bf16.msrb.mxu3 %v4615_v7 }
 0x38b   : > { %3115 = vmatpush.bf16.msrb.mxu3 %v4614_v25 }
 0x38d   : > { %v2359_v39 = vpop.f32.mrf.mxu3 }
 0x38f   : > { %3116 = vmatpush.bf16.msrb.mxu3 %v4613_v55 }
 0x392   : > { %2680 = vmatmul.bf16.vlgmr.msra.gmra.mxu3 %v2552_v42  ;;  %v2938_v42 = vpop.f32.mrf.mxu2 }
 0x393   : > { %3521 = vmatpush.bf16.msra.mxu3 %v4652_v43 }
 0x395   : > { %v2467_v40 = vpop.f32.mrf.mxu3 }
 0x396   : > { %v2468_v37 = vadd.f32 %v2467_v40, %v2343_v36  ;;  %v2909_v36 = vpop.f32.mrf.mxu1 }
 0x397   : > { %3522 = vmatpush.bf16.msra.mxu3 %v4651_v47 }
 0x39b   : > { %3523 = vmatpush.bf16.msra.mxu3 %v4650_v46 }
 0x39d   : > { %v2469_v49 = vpop.f32.mrf.mxu3 }
 0x39e   : > { %v2470_v2 = vadd.f32 %v2469_v49, %v2345_v12  ;;  %v2911_v49 = vpop.f32.mrf.mxu1 }
 0x39f   : > { %3524 = vmatpush.bf16.msra.mxu3 %v4649_v48 }
 0x3a2   : > { %2685 = vmatmul.bf16.gmra.mxu3 %v2557_v15 }
 0x3a3   : > { %3525 = vmatpush.bf16.msra.mxu3 %v4648_v51 }
 0x3a5   : > { %v2472_v18 = vpop.f32.mrf.mxu3 }
 0x3a6   : > { %v2473_v24 = vadd.f32 %v2472_v18, %v2348_v56  ;;  %v2914_v25 = vpop.f32.mrf.mxu1 }
 0x3a7   : > { %3526 = vmatpush.bf16.msra.mxu3 %v4647_v6 }
 0x3ad   : > { %v2474_v31 = vpop.f32.mrf.mxu3 }
 0x3ae   : > { %v2475_v45 = vadd.f32 %v2474_v31, %v2350_v11  ;;  %v6045_v31 = vpop.f32.mrf.mxu1 }
 0x3b2   : > { %2690 = vmatmul.bf16.gmra.mxu3 %v2561_v0 }
 0x3b5   : > { %v2477_v16 = vpop.f32.mrf.mxu3 }
 0x3b6   : > { %v2919_v43 = vpop.f32.mrf.mxu1 }
 0x3bd   : > { %v2479_v5 = vpop.f32.mrf.mxu3 }
 0x3be   : > { %v2921_v46 = vpop.f32.mrf.mxu1 }
 0x3c2   : > { %2695 = vmatmul.bf16.gmra.mxu3 %v2565_v32 }
 0x3c5   : > { %v2482_v57 = vpop.f32.mrf.mxu3 }
 0x3cd   : > { %v2484_v33 = vpop.f32.mrf.mxu3 }
 0x3ce   : > { %v2924_v33 = vpop.f32.mrf.mxu1 }
 0x3d2   : > { %3117 = vmatmul.bf16.vlgmr.msrb.gmra.mxu3 %v5589_v20  ;;  %v4646_v20 = vld [vmem:[%s6098_s3 + $0x308] sm:$0xff] }
 0x3d3   : > { %3527 = vmatpush.bf16.msra.mxu3 %v4646_v20 }
 0x3d5   : > { %v2496_v59 = vpop.f32.mrf.mxu3 }
 0x3d6   : > { %v2497_v3 = vadd.f32 %v2496_v59, %v2468_v37  ;;  %v2940_v37 = vpop.f32.mrf.mxu2  ;;  %v2926_v6 = vpop.f32.mrf.mxu1 }
 0x3d7   : > { %3528 = vmatpush.bf16.msra.mxu3 %v4645_v23 }
 0x3dd   : > { %v2498_v38 = vpop.f32.mrf.mxu3 }
 0x3de   : > { %v2499_v62 = vadd.f32 %v2498_v38, %v2470_v2 }
 0x3e2   : > { %3122 = vmatmul.bf16.gmra.mxu3 %v5668_v17  ;;  %v2715_v17 = vpop.f32.mrf.mxu0 }
 0x3e5   : > { %v2501_v52 = vpop.f32.mrf.mxu3 }
 0x3e6   : > { %v2502_v4 = vadd.f32 %v2501_v52, %v2473_v24  ;;  %v3325_v52 = vpop.f32.mrf.mxu1 }
 0x3ea   : > { %v2717_v12 = vpop.f32.mrf.mxu0 }
 0x3ed   : > { %v2503_v53 = vpop.f32.mrf.mxu3 }
 0x3ee   : > { %v2504_v60 = vadd.f32 %v2503_v53, %v2475_v45 }
 0x3f2   : > { %3127 = vmatmul.bf16.gmra.mxu3 %v5709_v13  ;;  %v2720_v56 = vpop.f32.mrf.mxu0 }
 0x3f3   : > { %v2941_v56 = vadd.f32 %v2940_v37, %v2911_v49 }
 0x3f5   : > { %v2506_v54 = vpop.f32.mrf.mxu3 }
 0x3f6   : > { %v3327_v54 = vpop.f32.mrf.mxu1 }
 0x3fa   : > { %v2722_v21 = vpop.f32.mrf.mxu0 }
 0x3fd   : > { %v2508_v30 = vpop.f32.mrf.mxu3 }
 0x402   : > { %4328 = vmatmul.msk.bf16.gmra.mxu3 %vm4327_vm9, %v5661_v29  ;;  %v2725_v8 = vpop.f32.mrf.mxu0 }
 0x405   : > { %v2511_v35 = vpop.f32.mrf.mxu3 }
 0x40a   : > { %v2727_v29 = vpop.f32.mrf.mxu0 }
 0x40d   : > { %v2513_v14 = vpop.f32.mrf.mxu3 }
 0x412   : > { %3529 = vmatmul.bf16.vlgmr.msra.gmra.mxu3 %v2557_v15  ;;  %v3147_v40 = vpop.f32.mrf.mxu0  ;;  %v2943_v15 = vpop.f32.mrf.mxu2 }
 0x415   : > { %v2681_v50 = vpop.f32.mrf.mxu3 }
 0x416   : > { %v2711_v28 = vadd.f32 %v2710_v26, %v2681_v50 }
 0x418   : > { %v2730_v11 = vadd.f32 %v2711_v28, %v2497_v3 }
 0x41a   : > { %v3149_v10 = vpop.f32.mrf.mxu0  ;;  %v6043_v55 = vpop.f32.mrf.mxu2 }
 0x41d   : > { %v2683_v34 = vpop.f32.mrf.mxu3 }
 0x41e   : > { %v2713_v58 = vadd.f32 %v2712_v27, %v2683_v34  ;;  %v4708_v34 = vld [vmem:[%s6099_s4] ss:$0 sm:$0xff] }
 0x420   : > { %v6035_v13 = vadd.f32 %v2713_v58, %v2499_v62 }
 0x422   : > { %3534 = vmatmul.bf16.gmra.mxu3 %v2561_v0  ;;  %v3152_v18 = vpop.f32.mrf.mxu0  ;;  %v2948_v0 = vpop.f32.mrf.mxu2  ;;  %v2959_v8 = vadd.f32 %v2941_v56, %v6035_v13 }
 0x425   : > { %v2686_v19 = vpop.f32.mrf.mxu3 }
 0x426   : > { %v2716_v22 = vadd.f32 %v2715_v17, %v2686_v19 }
 0x428   : > { %v6037_v1 = vadd.f32 %v2716_v22, %v2502_v4  ;;  %v3330_v22 = vpop.f32.mrf.mxu1 }
 0x42a   : > { %v2950_v5 = vpop.f32.mrf.mxu2 }
 0x42b   : > { %v2946_v5 = vadd.f32 %v6043_v55, %v6045_v31 }
 0x42d   : > { %v2688_v9 = vpop.f32.mrf.mxu3 }
 0x42e   : > { %v2718_v39 = vadd.f32 %v2717_v12, %v2688_v9 }
 0x430   : > { %v6039_v41 = vadd.f32 %v2718_v39, %v2504_v60  ;;  %v2939_v60 = vadd.f32 %v2938_v42, %v2909_v36  ;;  %v2944_v36 = vadd.f32 %v2943_v15, %v2914_v25 }
 0x432   : > { %3539 = vmatmul.bf16.gmra.mxu3 %v5726_v44  ;;  %v6047_v44 = vpop.f32.mrf.mxu0  ;;  %v2953_v48 = vpop.f32.mrf.mxu2  ;;  %v2958_v17 = vadd.f32 %v2939_v60, %v2730_v11  ;;  %v2960_v49 = vadd.f32 %v2944_v36, %v6037_v1  ;;  %v2961_v1 = vadd.f32 %v2946_v5, %v6039_v41 }
 0x435   : > { %v2691_v63 = vpop.f32.mrf.mxu3 }
 0x43a   : > { %v3157_v47 = vpop.f32.mrf.mxu0  ;;  %v2955_v3 = vpop.f32.mrf.mxu2 }
 0x43d   : > { %v2693_v7 = vpop.f32.mrf.mxu3 }
 0x442   : > { %3544 = vmatmul.bf16.gmra.mxu3 %v5705_v61  ;;  %v3159_v61 = vpop.f32.mrf.mxu0  ;;  %v3354_v20 = vpop.f32.mrf.mxu2 }
 0x443   : > { %v3355_v35 = vadd.f32 %v3354_v20, %v3325_v52 }
 0x445   : > { %v2696_v2 = vpop.f32.mrf.mxu3 }
 0x44a   : > { %v3162_v51 = vpop.f32.mrf.mxu0  ;;  %v3356_v26 = vpop.f32.mrf.mxu2 }
 0x44b   : > { %v3357_v39 = vadd.f32 %v3356_v26, %v3327_v54 }
 0x44d   : > { %v2698_v24 = vpop.f32.mrf.mxu3 }
 0x452   : > { %v3164_v38 = vpop.f32.mrf.mxu0  ;;  %v3359_v58 = vpop.f32.mrf.mxu2 }
 0x453   : > { %v3360_v0 = vadd.f32 %v3359_v58, %v3330_v22 }
 0x455   : > { %v3118_v45 = vpop.f32.mrf.mxu3 }
 0x456   : > { %v3148_v27 = vadd.f32 %v3147_v40, %v3118_v45  ;;  %v3332_v45 = vpop.f32.mrf.mxu1 }
 0x458   : > { %v3167_v12 = vadd.f32 %v3148_v27, %v2958_v17 }
 0x45a   : > { %v3559_v23 = vpop.f32.mrf.mxu0  ;;  %v3374_v28 = vadd.f32 %v3355_v35, %v3167_v12  ;;  %v3361_v2 = vpop.f32.mrf.mxu2 }
 0x45b   : > { %v3362_v33 = vadd.f32 %v3361_v2, %v3332_v45 }
 0x45d   : > { %v3120_v16 = vpop.f32.mrf.mxu3 }
 0x45e   : > { %v3150_v50 = vadd.f32 %v3149_v10, %v3120_v16 }
 0x460   : > { %v3168_v29 = vadd.f32 %v3150_v50, %v2959_v8 }
 0x462   : > { %v3561_v30 = vpop.f32.mrf.mxu0  ;;  %v3375_v37 = vadd.f32 %v3357_v39, %v3168_v29  ;;  %v3364_v48 = vpop.f32.mrf.mxu2 }
 0x465   : > { %v3123_v32 = vpop.f32.mrf.mxu3 }
 0x466   : > { %v3153_v40 = vadd.f32 %v3152_v18, %v3123_v32 }
 0x468   : > { %v3169_v13 = vadd.f32 %v3153_v40, %v2960_v49 }
 0x46a   : > { %v3564_v11 = vpop.f32.mrf.mxu0  ;;  %v3376_v25 = vadd.f32 %v3360_v0, %v3169_v13 }
 0x46d   : > { %v3125_v57 = vpop.f32.mrf.mxu3 }
 0x46e   : > { %v3155_v15 = vadd.f32 %v6047_v44, %v3125_v57 }
 0x470   : > { %v3170_v46 = vadd.f32 %v3155_v15, %v2961_v1 }
 0x472   : > { %v3566_v16 = vpop.f32.mrf.mxu0  ;;  %v3377_v6 = vadd.f32 %v3362_v33, %v3170_v46 }
 0x475   : > { %v3128_v59 = vpop.f32.mrf.mxu3 }
 0x476   : > { %v3335_v59 = vpop.f32.mrf.mxu1 }
 0x47a   : > { %v3569_v31 = vpop.f32.mrf.mxu0 }
 0x47d   : > { %v3130_v62 = vpop.f32.mrf.mxu3 }
 0x47e   : > { %v3366_v62 = vpop.f32.mrf.mxu2  ;;  %v3337_v41 = vpop.f32.mrf.mxu1 }
 0x482   : > { %v3571_v52 = vpop.f32.mrf.mxu0 }
 0x485   : > { %v3133_v4 = vpop.f32.mrf.mxu3 }
 0x486   : > { %v3369_v60 = vpop.f32.mrf.mxu2  ;;  %v3340_v27 = vpop.f32.mrf.mxu1 }
 0x48a   : > { %v3574_v54 = vpop.f32.mrf.mxu0 }
 0x48d   : > { %v3135_v53 = vpop.f32.mrf.mxu3 }
 0x48e   : > { %v3342_v12 = vpop.f32.mrf.mxu1 }
 0x492   : > { %v3576_v35 = vpop.f32.mrf.mxu0 }
 0x495   : > { %v3530_v14 = vpop.f32.mrf.mxu3 }
 0x496   : > { %v3560_v21 = vadd.f32 %v3559_v23, %v3530_v14 }
 0x498   : > { %v3579_v19 = vadd.f32 %v3560_v21, %v3374_v28 }
 0x49a   : > { %v3591_v9 = vadd.f32 %v4708_v34, %v3579_v19 }
 0x49c   : > { %v3599_v42 = vmax.f32 %v3591_v9, 0.0 }
 0x49d   : > { %v3532_v63 = vpop.f32.mrf.mxu3 }
 0x49e   : > { %3608 = vst.msk [vmem:[#allocation3] sm:$0xff] %vm3607_vm10, %v3599_v42  ;;  %v3562_v7 = vadd.f32 %v3561_v30, %v3532_v63  ;;  %v3371_v30 = vpop.f32.mrf.mxu2 }
 0x4a0   : > { %v3580_v10 = vadd.f32 %v3562_v7, %v3375_v37 }
 0x4a2   : > { %v3592_v24 = vadd.f32 %v4708_v34, %v3580_v10 }
 0x4a4   : > { %v3600_v43 = vmax.f32 %v3592_v24, 0.0 }
 0x4a5   : > { %v3535_v47 = vpop.f32.mrf.mxu3  ;;  %v3616_v50 = vld [vmem:[#allocation3] ss:$64 sm:$0x1] }
 0x4a6   : > { %3609 = vst.msk [vmem:[#allocation3 + $0x8] sm:$0xff] %vm3607_vm10, %v3600_v43  ;;  %v3565_v18 = vadd.f32 %v3564_v11, %v3535_v47 }
 0x4a8   : > { %v3581_v32 = vadd.f32 %v3565_v18, %v3376_v25 }
 0x4aa   : > { %v3593_v61 = vadd.f32 %v4708_v34, %v3581_v32 }
 0x4ac   : > { %v3601_v51 = vmax.f32 %v3593_v61, 0.0 }
 0x4ad   : > { %v3537_v3 = vpop.f32.mrf.mxu3  ;;  %v3618_v56 = vld [vmem:[#allocation3 + $0xa] ss:$64 sm:$0x1] }
 0x4ae   : > { %3610 = vst.msk [vmem:[#allocation3 + $0x10] sm:$0xff] %vm3607_vm10, %v3601_v51  ;;  %v3567_v55 = vadd.f32 %v3566_v16, %v3537_v3  ;;  %v3619_v28 = vmax.f32 %v3616_v50, %v3618_v56 }
 0x4b0   : > { %v3582_v44 = vadd.f32 %v3567_v55, %v3377_v6 }
 0x4b2   : > { %v3594_v57 = vadd.f32 %v4708_v34, %v3582_v44 }
 0x4b4   : > { %v3602_v38 = vmax.f32 %v3594_v57, 0.0 }
 0x4b5   : > { %v3540_v20 = vpop.f32.mrf.mxu3  ;;  %v3621_v23 = vld [vmem:[#allocation3 + $0x14] ss:$64 sm:$0x1] }
 0x4b6   : > { %3611 = vst.msk [vmem:[#allocation3 + $0x18] sm:$0xff] %vm3607_vm10, %v3602_v38 }
 0x4bd   : > { %v3542_v4 = vpop.f32.mrf.mxu3  ;;  %v3623_v26 = vld [vmem:[#allocation3 + $0x1e] ss:$64 sm:$0x1] }
 0x4be   : > { %v3624_v53 = vmax.f32 %v3621_v23, %v3623_v26 }
 0x4c0   : > { %3626 = vrot.lane.b32.xlu1 %v3624_v53, %s4779_s30 }
 0x4c5   : > { %v3545_v17 = vpop.f32.mrf.mxu3 }
 0x4cd   : > { %v3547_v14 = vpop.f32.mrf.mxu3 }
 0x532   : > { %v3627_v21 = vpop.permute.xlu1 %3626 }
 0x533   : > { %v3629_v34 = vsel %vm3607_vm10, %v3619_v28, %v3627_v21 }
 0x534   : > { %3631 = vst.msk [vmem:[%s217_s10] sm:$0x1] %vm3630_vm11, %v3629_v34 }
 0x535   : > { %4739 = shalt.err (!%p4736_p3)
}
 0x536   : > { %4664 = dma.vmem_to_hbm [thread:$0]  (%p4848_p5), %s3644_s11, 16, %s3646_s12, %s3633_s13  }
 0x537 PF: > { %p4670_p4 = scmp.ge.s32.totalorder %s4774_s21, 2  ;;  %s3657_s26 = sand.u32 1, %s4762_s18  }
 0x538   : > { %s3658_s30 = scalar_lea.sflag [#allocation5], %s3657_s26 }
 0x539   : > { %p4667_p7 = pnand %p4670_p4, %p4852_p6 }
 0x53b   : > { %p4668_p8 = pneg %p4667_p7 }
 0x53d   : > { %4757 = dma.done.wait (%p4668_p8), %s3658_s30, 16  }
 0x53e   : > { %4759 = vsyncadd (%p4668_p8), %s3658_s30, 4294967280  ;;  %p15_p9 = scmp.ge.s32.totalorder %s4835_s24, 4   ;;  %s6103_s18 = smov %s4766_s19 }
 0x53f   : > { %s6104_s19 = smov %s4770_s20  ;;  %s6105_s20 = smov %s4846_s27 }
 0x540   : > { %s6106_s21 = smov %s4835_s24  ;;  %17 = sbr.rel (!%p15_p9) target bundleno = 3 (0x3), region = 109 }
 0x545   :  { %3663 = vsyncpa [#allocation5], 1 }
 0x546   :  { %3665 = vsyncpa [#allocation5 + $0x1], 1 }

</bundles_post_ra>
